<compile_context>
chip_gen: v6e
topology: v6e:2x2x1
jax: 0.10.0
libtpu: 0.0.40
codegen_flags: <defaults>
</compile_context>

<pallas_src>
import functools

import jax
import jax.numpy as jnp
import numpy as np
from jax import lax
from jax.experimental import pallas as pl
from jax.experimental.pallas import tpu as pltpu


def _relation_attn_kernel(head_dim, s_chunk,
                          q_ref, wq_ref, bq_ref,
                          k_ref, v_ref,
                          kbT_ref, vbT_ref,
                          o_ref):
    f32 = jnp.float32
    scale = 1.0 / (head_dim ** 0.5)

    # ---- Q projection on the MXU; the 1/sqrt(D) score scale is folded into Q
    #      (both score terms are linear in Q), scaling a (TQ, D) tile only. ----
    q_in = q_ref[0]                                                    # (TQ, H) f32
    q_f32 = (jnp.dot(q_in, wq_ref[...], preferred_element_type=f32)
             + bq_ref[...]) * scale                                    # (TQ, D) f32
    q_bf16 = q_f32.astype(jnp.bfloat16)

    k_proj = k_ref[0]                                                  # (S, D) bf16
    v_proj = v_ref[0]                                                  # (S, D) bf16

    # ---- attn_1[i, j] = sum_d Q[i, d] * K[j, d]   (MXU, contract last dims,
    #      bf16 inputs / f32 accumulation, no explicit transpose) ----
    scores = lax.dot_general(q_bf16, k_proj, (((1,), (1,)), ((), ())),
                             preferred_element_type=f32)               # (TQ, S)

    # ---- attn_2[i, j] = sum_d Q[i, d] * k_bias[i, j, d]   (VPU MAC over d).
    #      kbT is the host-transposed bias: kbT[i, d, j] == k_bias[i, j, d],
    #      so each d-slice is a lane-dense (TQ, S) tile. Runs in the VPU slots
    #      and overlaps with the MXU work above/below. ----
    for d in range(head_dim):
        scores += q_f32[:, d:d + 1] * kbT_ref[:, d, :].astype(f32)

    # TODO(synk): optional attention `mask` argument not implemented (mask=None path only).

    # ---- numerically stable softmax with exact normalisation ----
    m = jnp.max(scores, axis=-1, keepdims=True)
    e = jnp.exp(scores - m)
    w = e / jnp.sum(e, axis=-1, keepdims=True)                         # (TQ, S) f32

    # ---- values_1 = w @ V   (MXU) ----
    vals = jnp.dot(w.astype(jnp.bfloat16), v_proj,
                   preferred_element_type=f32)                         # (TQ, D) f32

    # ---- values_2[i, d] = sum_j w[i, j] * v_bias[i, j, d]
    #      (VPU multiply + XLU lane reduce over the key axis, chunked to bound
    #       the live f32 intermediate). vbT[i, d, j] == v_bias[i, j, d]. ----
    S = w.shape[-1]
    for s0 in range(0, S, s_chunk):
        cs = min(s_chunk, S - s0)
        vb_c = vbT_ref[:, :, s0:s0 + cs].astype(f32)                   # (TQ, D, cs)
        vals += jnp.sum(w[:, None, s0:s0 + cs] * vb_c, axis=-1)        # (TQ, D)

    o_ref[0] = vals.astype(o_ref.dtype)


def _vmem_capacity_bytes():
    """Generation-aware physical VMEM (128 MiB on v5e/v6e, 64 MiB on v7x)."""
    try:
        info = pltpu.get_tpu_info()
        cap = getattr(info, "vmem_capacity_bytes", None)
        if cap:
            return int(cap)
    except Exception:
        pass
    return 64 << 20   # conservative fallback (v7x per-core VMEM)


def _vmem_estimate_bytes(tq, S, D, H, s_chunk):
    """Conservative VMEM estimate: double-buffered pipelined blocks + in-kernel
    f32 intermediates (scores/e/w, Q copies, values accumulator + one chunk
    product, bias-slice upcasts) + Mosaic scratch headroom."""
    f32, bf16, db = 4, 2, 2
    bias_tiles = db * 2 * tq * D * S * bf16          # kbT + vbT blocks
    kv_tiles = db * 2 * S * D * bf16                 # projected K, V blocks
    q_tile = db * tq * H * f32
    weights = db * (H * D + D) * f32
    out_tile = db * tq * D * f32
    interm = (6 * tq * S + 4 * tq * D + tq * D * min(S, s_chunk)) * f32
    headroom = 2 << 20
    return bias_tiles + kv_tiles + q_tile + weights + out_tile + interm + headroom


def _choose_query_tile(S, D, H, s_chunk, budget_bytes):
    """Largest TQ (multiple of 8 dividing S, capped at 256) whose estimated
    VMEM footprint fits the budget; falls back to the smallest candidate."""
    cands = [t for t in range(8, min(S, 256) + 1, 8) if S % t == 0]
    if not cands:
        cands = [S]   # tiny / non-multiple-of-8 sequence lengths
    for t in sorted(cands, reverse=True):
        if _vmem_estimate_bytes(t, S, D, H, s_chunk) <= budget_bytes:
            return t
    return min(cands)


def relation_aware_attention_head(query, key, value,
                                  wq, bq, wk, bk, wv, bv,
                                  k_bias, v_bias,
                                  *, stream_dtype=jnp.bfloat16):
    B, S, H = query.shape
    D = wq.shape[1]

    cap = _vmem_capacity_bytes()
    budget = int(0.70 * cap)                      # tiling budget; leaves headroom
    s_chunk = S if S <= 128 else 128
    TQ = _choose_query_tile(S, D, H, s_chunk, budget)
    assert S % TQ == 0

    # Hoist the K / V projections out of the per-grid-step body: computed once
    # by XLA and streamed as (B, S, D) bf16 (the kernel would otherwise
    # re-fetch and re-project the full (S, H) key/value every grid step).
    k_proj = (jnp.einsum('bsh,hd->bsd', key, wk) + bk).astype(stream_dtype)
    v_proj = (jnp.einsum('bsh,hd->bsd', value, wv) + bv).astype(stream_dtype)

    # Relative-position biases: transpose so the streamed minor dim is the
    # lane-dense key axis, and stream in bf16 (halves the dominant HBM stream).
    kbT = jnp.transpose(k_bias, (0, 2, 1)).astype(stream_dtype)   # (S, D, S)
    vbT = jnp.transpose(v_bias, (0, 2, 1)).astype(stream_dtype)   # (S, D, S)

    bq2 = bq.reshape(1, D)

    kernel = functools.partial(_relation_attn_kernel, D, s_chunk)

    # Grid = (query tiles, batch): the bias block index changes only on the
    # OUTER q axis, so the (TQ, D, S) bias tiles stay resident across the
    # batch axis.  q is "parallel" (megacore shards it, so the bias stream is
    # fetched once); b is "arbitrary" (sequential).
    grid = (S // TQ, B)

    q_spec = pl.BlockSpec((1, TQ, H), lambda q, b: (b, q, 0))
    w_spec = pl.BlockSpec((H, D), lambda q, b: (0, 0))
    b_spec = pl.BlockSpec((1, D), lambda q, b: (0, 0))
    kv_spec = pl.BlockSpec((1, S, D), lambda q, b: (b, 0, 0))
    bias_spec = pl.BlockSpec((TQ, D, S), lambda q, b: (q, 0, 0))
    out_spec = pl.BlockSpec((1, TQ, D), lambda q, b: (b, q, 0))

    est = _vmem_estimate_bytes(TQ, S, D, H, s_chunk)
    vmem_limit = int(min(0.80 * cap, max(2 * est, 32 << 20)))

    return pl.pallas_call(
        kernel,
        out_shape=jax.ShapeDtypeStruct((B, S, D), jnp.float32),
        grid_spec=pltpu.PrefetchScalarGridSpec(
            num_scalar_prefetch=0,
            grid=grid,
            in_specs=[
                q_spec,                 # query (B, S, H)
                w_spec, b_spec,         # Wq, bq
                kv_spec, kv_spec,       # projected K, V (B, S, D) bf16
                bias_spec, bias_spec,   # kbT, vbT (S, D, S) bf16
            ],
            out_specs=out_spec,
        ),
        compiler_params=pltpu.CompilerParams(
            dimension_semantics=("parallel", "arbitrary"),
            vmem_limit_bytes=vmem_limit),
    )(query, wq, bq2, k_proj, v_proj, kbT, vbT)


def _reference(query, key, value, wq, bq, wk, bk, wv, bv, k_bias, v_bias):
    D = wq.shape[1]
    Q = query @ wq + bq
    K = key @ wk + bk
    V = value @ wv + bv
    attn_1 = jnp.einsum('bid,bjd->bij', Q, K)
    attn_2 = jnp.einsum('bid,ijd->bij', Q, k_bias)
    scores = (attn_1 + attn_2) / (D ** 0.5)
    w = jax.nn.softmax(scores, axis=-1)
    values_1 = jnp.einsum('bij,bjd->bid', w, V)
    values_2 = jnp.einsum('bij,ijd->bid', w, v_bias)
    return values_1 + values_2


if __name__ == "__main__":
    B, S, H, D = 2, 8, 32, 16  # batch, seq, hidden_size, head_dim

    key0 = jax.random.PRNGKey(0)
    keys = jax.random.split(key0, 11)

    query = jax.random.normal(keys[0], (B, S, H), dtype=jnp.float32)
    key_t = jax.random.normal(keys[1], (B, S, H), dtype=jnp.float32)
    value = jax.random.normal(keys[2], (B, S, H), dtype=jnp.float32)

    # Deterministic synthetic parameters (nn.Linear(hidden_size, head_dim) shapes).
    wq = jax.random.normal(keys[3], (H, D), dtype=jnp.float32) * 0.1
    bq = jax.random.normal(keys[4], (D,), dtype=jnp.float32) * 0.1
    wk = jax.random.normal(keys[5], (H, D), dtype=jnp.float32) * 0.1
    bk = jax.random.normal(keys[6], (D,), dtype=jnp.float32) * 0.1
    wv = jax.random.normal(keys[7], (H, D), dtype=jnp.float32) * 0.1
    bv = jax.random.normal(keys[8], (D,), dtype=jnp.float32) * 0.1

    # Relative-position bias matrices (seq, seq, head_dim).
    k_bias = jax.random.normal(keys[9], (S, S, D), dtype=jnp.float32) * 0.1
    v_bias = jax.random.normal(keys[10], (S, S, D), dtype=jnp.float32) * 0.1

    out = relation_aware_attention_head(
        query, key_t, value, wq, bq, wk, bk, wv, bv, k_bias, v_bias)
    out = jax.block_until_ready(out)

    ref = _reference(query, key_t, value, wq, bq, wk, bk, wv, bv, k_bias, v_bias)
    # Tolerance absorbs the bf16 streaming of K/V projections and bias matrices
    # (all accumulation is f32; softmax normalisation is an exact divide).
    np.testing.assert_allclose(np.asarray(out), np.asarray(ref), rtol=2e-2, atol=2e-2)

    print("KERNEL_OK")
</pallas_src>

<mosaic_0001>
module attributes {stable_mosaic.version = 11 : i64} {
  func.func @_relation_attn_kernel(%arg0: i32, %arg1: i32, %arg2: memref<1x8x32xf32, #tpu.memory_space<vmem>>, %arg3: memref<32x16xf32, #tpu.memory_space<vmem>>, %arg4: memref<1x16xf32, #tpu.memory_space<vmem>>, %arg5: memref<1x8x16xbf16, #tpu.memory_space<vmem>>, %arg6: memref<1x8x16xbf16, #tpu.memory_space<vmem>>, %arg7: memref<8x16x8xbf16, #tpu.memory_space<vmem>>, %arg8: memref<8x16x8xbf16, #tpu.memory_space<vmem>>, %arg9: memref<1x8x16xf32, #tpu.memory_space<vmem>>) attributes {dimension_semantics = [#tpu.dimension_semantics<parallel>, #tpu.dimension_semantics<arbitrary>], iteration_bounds = array<i64: 1, 2>, scalar_prefetch = 0 : i64, scratch_operands = 0 : i64, tpu.core_type = #tpu.core_type<tc>, window_params = [{transform_indices = @transform_0, window_bounds = array<i64: 1, 8, 32>}, {pipeline_mode = #tpu.pipeline_mode<synchronous>, transform_indices = @transform_1, window_bounds = array<i64: 32, 16>}, {pipeline_mode = #tpu.pipeline_mode<synchronous>, transform_indices = @transform_2, window_bounds = array<i64: 1, 16>}, {transform_indices = @transform_3, window_bounds = array<i64: 1, 8, 16>}, {transform_indices = @transform_4, window_bounds = array<i64: 1, 8, 16>}, {transform_indices = @transform_5, window_bounds = array<i64: 8, 16, 8>}, {transform_indices = @transform_6, window_bounds = array<i64: 8, 16, 8>}, {transform_indices = @transform_7, window_bounds = array<i64: 1, 8, 16>}]} {
    %c0 = arith.constant 0 : index
    %c0_0 = arith.constant 0 : index
    %c0_1 = arith.constant 0 : index
    %0 = vector.load %arg2[%c0, %c0_0, %c0_1] : memref<1x8x32xf32, #tpu.memory_space<vmem>>, vector<1x8x32xf32>
    %1 = vector.shape_cast %0 : vector<1x8x32xf32> to vector<8x32xf32>
    %c0_2 = arith.constant 0 : index
    %c0_3 = arith.constant 0 : index
    %2 = vector.load %arg3[%c0_2, %c0_3] : memref<32x16xf32, #tpu.memory_space<vmem>>, vector<32x16xf32>
    %cst = arith.constant dense<0.000000e+00> : vector<8x16xf32>
    %3 = tpu.matmul %1, %2, %cst {dimension_numbers = #tpu.dot_dimension_numbers<[1], [0], [0], [1], [0, 0, 1, 1], [], []>} : vector<8x32xf32>, vector<32x16xf32>, vector<8x16xf32> -> vector<8x16xf32>
    %c0_4 = arith.constant 0 : index
    %c0_5 = arith.constant 0 : index
    %4 = vector.load %arg4[%c0_4, %c0_5] : memref<1x16xf32, #tpu.memory_space<vmem>>, vector<1x16xf32>
    %5 = vector.broadcast %4 : vector<1x16xf32> to vector<8x16xf32>
    %6 = arith.addf %3, %5 : vector<8x16xf32>
    %cst_6 = arith.constant 2.500000e-01 : f32
    %7 = vector.broadcast %cst_6 : f32 to vector<8x16xf32>
    %8 = arith.mulf %6, %7 : vector<8x16xf32>
    %9 = arith.truncf %8 : vector<8x16xf32> to vector<8x16xbf16>
    %c0_7 = arith.constant 0 : index
    %c0_8 = arith.constant 0 : index
    %c0_9 = arith.constant 0 : index
    %10 = vector.load %arg5[%c0_7, %c0_8, %c0_9] : memref<1x8x16xbf16, #tpu.memory_space<vmem>>, vector<1x8x16xbf16>
    %11 = vector.shape_cast %10 : vector<1x8x16xbf16> to vector<8x16xbf16>
    %c0_10 = arith.constant 0 : index
    %c0_11 = arith.constant 0 : index
    %c0_12 = arith.constant 0 : index
    %12 = vector.load %arg6[%c0_10, %c0_11, %c0_12] : memref<1x8x16xbf16, #tpu.memory_space<vmem>>, vector<1x8x16xbf16>
    %13 = vector.shape_cast %12 : vector<1x8x16xbf16> to vector<8x16xbf16>
    %cst_13 = arith.constant dense<0.000000e+00> : vector<8x8xf32>
    %14 = tpu.matmul %9, %11, %cst_13 {dimension_numbers = #tpu.dot_dimension_numbers<[1], [1], [0], [0], [0, 0, 1, 0], [], []>} : vector<8x16xbf16>, vector<8x16xbf16>, vector<8x8xf32> -> vector<8x8xf32>
    %15 = vector.extract_strided_slice %8 {offsets = [0, 0], sizes = [8, 1], strides = [1, 1]} : vector<8x16xf32> to vector<8x1xf32>
    %c0_14 = arith.constant 0 : index
    %c0_15 = arith.constant 0 : index
    %c0_16 = arith.constant 0 : index
    %16 = vector.load %arg7[%c0_14, %c0_15, %c0_16] : memref<8x16x8xbf16, #tpu.memory_space<vmem>>, vector<8x1x8xbf16>
    %17 = vector.shape_cast %16 : vector<8x1x8xbf16> to vector<8x8xbf16>
    %18 = arith.extf %17 : vector<8x8xbf16> to vector<8x8xf32>
    %19 = vector.broadcast %15 : vector<8x1xf32> to vector<8x8xf32>
    %20 = arith.mulf %19, %18 : vector<8x8xf32>
    %21 = arith.addf %14, %20 : vector<8x8xf32>
    %22 = vector.extract_strided_slice %8 {offsets = [0, 1], sizes = [8, 1], strides = [1, 1]} : vector<8x16xf32> to vector<8x1xf32>
    %c0_17 = arith.constant 0 : index
    %c1 = arith.constant 1 : index
    %c0_18 = arith.constant 0 : index
    %23 = vector.load %arg7[%c0_17, %c1, %c0_18] : memref<8x16x8xbf16, #tpu.memory_space<vmem>>, vector<8x1x8xbf16>
    %24 = vector.shape_cast %23 : vector<8x1x8xbf16> to vector<8x8xbf16>
    %25 = arith.extf %24 : vector<8x8xbf16> to vector<8x8xf32>
    %26 = vector.broadcast %22 : vector<8x1xf32> to vector<8x8xf32>
    %27 = arith.mulf %26, %25 : vector<8x8xf32>
    %28 = arith.addf %21, %27 : vector<8x8xf32>
    %29 = vector.extract_strided_slice %8 {offsets = [0, 2], sizes = [8, 1], strides = [1, 1]} : vector<8x16xf32> to vector<8x1xf32>
    %c0_19 = arith.constant 0 : index
    %c2 = arith.constant 2 : index
    %c0_20 = arith.constant 0 : index
    %30 = vector.load %arg7[%c0_19, %c2, %c0_20] : memref<8x16x8xbf16, #tpu.memory_space<vmem>>, vector<8x1x8xbf16>
    %31 = vector.shape_cast %30 : vector<8x1x8xbf16> to vector<8x8xbf16>
    %32 = arith.extf %31 : vector<8x8xbf16> to vector<8x8xf32>
    %33 = vector.broadcast %29 : vector<8x1xf32> to vector<8x8xf32>
    %34 = arith.mulf %33, %32 : vector<8x8xf32>
    %35 = arith.addf %28, %34 : vector<8x8xf32>
    %36 = vector.extract_strided_slice %8 {offsets = [0, 3], sizes = [8, 1], strides = [1, 1]} : vector<8x16xf32> to vector<8x1xf32>
    %c0_21 = arith.constant 0 : index
    %c3 = arith.constant 3 : index
    %c0_22 = arith.constant 0 : index
    %37 = vector.load %arg7[%c0_21, %c3, %c0_22] : memref<8x16x8xbf16, #tpu.memory_space<vmem>>, vector<8x1x8xbf16>
    %38 = vector.shape_cast %37 : vector<8x1x8xbf16> to vector<8x8xbf16>
    %39 = arith.extf %38 : vector<8x8xbf16> to vector<8x8xf32>
    %40 = vector.broadcast %36 : vector<8x1xf32> to vector<8x8xf32>
    %41 = arith.mulf %40, %39 : vector<8x8xf32>
    %42 = arith.addf %35, %41 : vector<8x8xf32>
    %43 = vector.extract_strided_slice %8 {offsets = [0, 4], sizes = [8, 1], strides = [1, 1]} : vector<8x16xf32> to vector<8x1xf32>
    %c0_23 = arith.constant 0 : index
    %c4 = arith.constant 4 : index
    %c0_24 = arith.constant 0 : index
    %44 = vector.load %arg7[%c0_23, %c4, %c0_24] : memref<8x16x8xbf16, #tpu.memory_space<vmem>>, vector<8x1x8xbf16>
    %45 = vector.shape_cast %44 : vector<8x1x8xbf16> to vector<8x8xbf16>
    %46 = arith.extf %45 : vector<8x8xbf16> to vector<8x8xf32>
    %47 = vector.broadcast %43 : vector<8x1xf32> to vector<8x8xf32>
    %48 = arith.mulf %47, %46 : vector<8x8xf32>
    %49 = arith.addf %42, %48 : vector<8x8xf32>
    %50 = vector.extract_strided_slice %8 {offsets = [0, 5], sizes = [8, 1], strides = [1, 1]} : vector<8x16xf32> to vector<8x1xf32>
    %c0_25 = arith.constant 0 : index
    %c5 = arith.constant 5 : index
    %c0_26 = arith.constant 0 : index
    %51 = vector.load %arg7[%c0_25, %c5, %c0_26] : memref<8x16x8xbf16, #tpu.memory_space<vmem>>, vector<8x1x8xbf16>
    %52 = vector.shape_cast %51 : vector<8x1x8xbf16> to vector<8x8xbf16>
    %53 = arith.extf %52 : vector<8x8xbf16> to vector<8x8xf32>
    %54 = vector.broadcast %50 : vector<8x1xf32> to vector<8x8xf32>
    %55 = arith.mulf %54, %53 : vector<8x8xf32>
    %56 = arith.addf %49, %55 : vector<8x8xf32>
    %57 = vector.extract_strided_slice %8 {offsets = [0, 6], sizes = [8, 1], strides = [1, 1]} : vector<8x16xf32> to vector<8x1xf32>
    %c0_27 = arith.constant 0 : index
    %c6 = arith.constant 6 : index
    %c0_28 = arith.constant 0 : index
    %58 = vector.load %arg7[%c0_27, %c6, %c0_28] : memref<8x16x8xbf16, #tpu.memory_space<vmem>>, vector<8x1x8xbf16>
    %59 = vector.shape_cast %58 : vector<8x1x8xbf16> to vector<8x8xbf16>
    %60 = arith.extf %59 : vector<8x8xbf16> to vector<8x8xf32>
    %61 = vector.broadcast %57 : vector<8x1xf32> to vector<8x8xf32>
    %62 = arith.mulf %61, %60 : vector<8x8xf32>
    %63 = arith.addf %56, %62 : vector<8x8xf32>
    %64 = vector.extract_strided_slice %8 {offsets = [0, 7], sizes = [8, 1], strides = [1, 1]} : vector<8x16xf32> to vector<8x1xf32>
    %c0_29 = arith.constant 0 : index
    %c7 = arith.constant 7 : index
    %c0_30 = arith.constant 0 : index
    %65 = vector.load %arg7[%c0_29, %c7, %c0_30] : memref<8x16x8xbf16, #tpu.memory_space<vmem>>, vector<8x1x8xbf16>
    %66 = vector.shape_cast %65 : vector<8x1x8xbf16> to vector<8x8xbf16>
    %67 = arith.extf %66 : vector<8x8xbf16> to vector<8x8xf32>
    %68 = vector.broadcast %64 : vector<8x1xf32> to vector<8x8xf32>
    %69 = arith.mulf %68, %67 : vector<8x8xf32>
    %70 = arith.addf %63, %69 : vector<8x8xf32>
    %71 = vector.extract_strided_slice %8 {offsets = [0, 8], sizes = [8, 1], strides = [1, 1]} : vector<8x16xf32> to vector<8x1xf32>
    %c0_31 = arith.constant 0 : index
    %c8 = arith.constant 8 : index
    %c0_32 = arith.constant 0 : index
    %72 = vector.load %arg7[%c0_31, %c8, %c0_32] : memref<8x16x8xbf16, #tpu.memory_space<vmem>>, vector<8x1x8xbf16>
    %73 = vector.shape_cast %72 : vector<8x1x8xbf16> to vector<8x8xbf16>
    %74 = arith.extf %73 : vector<8x8xbf16> to vector<8x8xf32>
    %75 = vector.broadcast %71 : vector<8x1xf32> to vector<8x8xf32>
    %76 = arith.mulf %75, %74 : vector<8x8xf32>
    %77 = arith.addf %70, %76 : vector<8x8xf32>
    %78 = vector.extract_strided_slice %8 {offsets = [0, 9], sizes = [8, 1], strides = [1, 1]} : vector<8x16xf32> to vector<8x1xf32>
    %c0_33 = arith.constant 0 : index
    %c9 = arith.constant 9 : index
    %c0_34 = arith.constant 0 : index
    %79 = vector.load %arg7[%c0_33, %c9, %c0_34] : memref<8x16x8xbf16, #tpu.memory_space<vmem>>, vector<8x1x8xbf16>
    %80 = vector.shape_cast %79 : vector<8x1x8xbf16> to vector<8x8xbf16>
    %81 = arith.extf %80 : vector<8x8xbf16> to vector<8x8xf32>
    %82 = vector.broadcast %78 : vector<8x1xf32> to vector<8x8xf32>
    %83 = arith.mulf %82, %81 : vector<8x8xf32>
    %84 = arith.addf %77, %83 : vector<8x8xf32>
    %85 = vector.extract_strided_slice %8 {offsets = [0, 10], sizes = [8, 1], strides = [1, 1]} : vector<8x16xf32> to vector<8x1xf32>
    %c0_35 = arith.constant 0 : index
    %c10 = arith.constant 10 : index
    %c0_36 = arith.constant 0 : index
    %86 = vector.load %arg7[%c0_35, %c10, %c0_36] : memref<8x16x8xbf16, #tpu.memory_space<vmem>>, vector<8x1x8xbf16>
    %87 = vector.shape_cast %86 : vector<8x1x8xbf16> to vector<8x8xbf16>
    %88 = arith.extf %87 : vector<8x8xbf16> to vector<8x8xf32>
    %89 = vector.broadcast %85 : vector<8x1xf32> to vector<8x8xf32>
    %90 = arith.mulf %89, %88 : vector<8x8xf32>
    %91 = arith.addf %84, %90 : vector<8x8xf32>
    %92 = vector.extract_strided_slice %8 {offsets = [0, 11], sizes = [8, 1], strides = [1, 1]} : vector<8x16xf32> to vector<8x1xf32>
    %c0_37 = arith.constant 0 : index
    %c11 = arith.constant 11 : index
    %c0_38 = arith.constant 0 : index
    %93 = vector.load %arg7[%c0_37, %c11, %c0_38] : memref<8x16x8xbf16, #tpu.memory_space<vmem>>, vector<8x1x8xbf16>
    %94 = vector.shape_cast %93 : vector<8x1x8xbf16> to vector<8x8xbf16>
    %95 = arith.extf %94 : vector<8x8xbf16> to vector<8x8xf32>
    %96 = vector.broadcast %92 : vector<8x1xf32> to vector<8x8xf32>
    %97 = arith.mulf %96, %95 : vector<8x8xf32>
    %98 = arith.addf %91, %97 : vector<8x8xf32>
    %99 = vector.extract_strided_slice %8 {offsets = [0, 12], sizes = [8, 1], strides = [1, 1]} : vector<8x16xf32> to vector<8x1xf32>
    %c0_39 = arith.constant 0 : index
    %c12 = arith.constant 12 : index
    %c0_40 = arith.constant 0 : index
    %100 = vector.load %arg7[%c0_39, %c12, %c0_40] : memref<8x16x8xbf16, #tpu.memory_space<vmem>>, vector<8x1x8xbf16>
    %101 = vector.shape_cast %100 : vector<8x1x8xbf16> to vector<8x8xbf16>
    %102 = arith.extf %101 : vector<8x8xbf16> to vector<8x8xf32>
    %103 = vector.broadcast %99 : vector<8x1xf32> to vector<8x8xf32>
    %104 = arith.mulf %103, %102 : vector<8x8xf32>
    %105 = arith.addf %98, %104 : vector<8x8xf32>
    %106 = vector.extract_strided_slice %8 {offsets = [0, 13], sizes = [8, 1], strides = [1, 1]} : vector<8x16xf32> to vector<8x1xf32>
    %c0_41 = arith.constant 0 : index
    %c13 = arith.constant 13 : index
    %c0_42 = arith.constant 0 : index
    %107 = vector.load %arg7[%c0_41, %c13, %c0_42] : memref<8x16x8xbf16, #tpu.memory_space<vmem>>, vector<8x1x8xbf16>
    %108 = vector.shape_cast %107 : vector<8x1x8xbf16> to vector<8x8xbf16>
    %109 = arith.extf %108 : vector<8x8xbf16> to vector<8x8xf32>
    %110 = vector.broadcast %106 : vector<8x1xf32> to vector<8x8xf32>
    %111 = arith.mulf %110, %109 : vector<8x8xf32>
    %112 = arith.addf %105, %111 : vector<8x8xf32>
    %113 = vector.extract_strided_slice %8 {offsets = [0, 14], sizes = [8, 1], strides = [1, 1]} : vector<8x16xf32> to vector<8x1xf32>
    %c0_43 = arith.constant 0 : index
    %c14 = arith.constant 14 : index
    %c0_44 = arith.constant 0 : index
    %114 = vector.load %arg7[%c0_43, %c14, %c0_44] : memref<8x16x8xbf16, #tpu.memory_space<vmem>>, vector<8x1x8xbf16>
    %115 = vector.shape_cast %114 : vector<8x1x8xbf16> to vector<8x8xbf16>
    %116 = arith.extf %115 : vector<8x8xbf16> to vector<8x8xf32>
    %117 = vector.broadcast %113 : vector<8x1xf32> to vector<8x8xf32>
    %118 = arith.mulf %117, %116 : vector<8x8xf32>
    %119 = arith.addf %112, %118 : vector<8x8xf32>
    %120 = vector.extract_strided_slice %8 {offsets = [0, 15], sizes = [8, 1], strides = [1, 1]} : vector<8x16xf32> to vector<8x1xf32>
    %c0_45 = arith.constant 0 : index
    %c15 = arith.constant 15 : index
    %c0_46 = arith.constant 0 : index
    %121 = vector.load %arg7[%c0_45, %c15, %c0_46] : memref<8x16x8xbf16, #tpu.memory_space<vmem>>, vector<8x1x8xbf16>
    %122 = vector.shape_cast %121 : vector<8x1x8xbf16> to vector<8x8xbf16>
    %123 = arith.extf %122 : vector<8x8xbf16> to vector<8x8xf32>
    %124 = vector.broadcast %120 : vector<8x1xf32> to vector<8x8xf32>
    %125 = arith.mulf %124, %123 : vector<8x8xf32>
    %126 = arith.addf %119, %125 : vector<8x8xf32>
    %cst_47 = arith.constant dense<0xFF800000> : vector<8xf32>
    %127 = vector.multi_reduction <maximumf>, %126, %cst_47 [1] : vector<8x8xf32> to vector<8xf32>
    %128 = vector.shape_cast %127 : vector<8xf32> to vector<8x1xf32>
    %129 = vector.broadcast %128 : vector<8x1xf32> to vector<8x8xf32>
    %130 = arith.subf %126, %129 : vector<8x8xf32>
    %131 = math.exp %130 : vector<8x8xf32>
    %cst_48 = arith.constant dense<0.000000e+00> : vector<8xf32>
    %132 = vector.multi_reduction <add>, %131, %cst_48 [1] : vector<8x8xf32> to vector<8xf32>
    %133 = vector.shape_cast %132 : vector<8xf32> to vector<8x1xf32>
    %134 = vector.broadcast %133 : vector<8x1xf32> to vector<8x8xf32>
    %135 = arith.divf %131, %134 : vector<8x8xf32>
    %136 = arith.truncf %135 : vector<8x8xf32> to vector<8x8xbf16>
    %cst_49 = arith.constant dense<0.000000e+00> : vector<8x16xf32>
    %137 = tpu.matmul %136, %13, %cst_49 {dimension_numbers = #tpu.dot_dimension_numbers<[1], [0], [0], [1], [0, 0, 1, 1], [], []>} : vector<8x8xbf16>, vector<8x16xbf16>, vector<8x16xf32> -> vector<8x16xf32>
    %c0_50 = arith.constant 0 : index
    %c0_51 = arith.constant 0 : index
    %c0_52 = arith.constant 0 : index
    %138 = vector.load %arg8[%c0_50, %c0_51, %c0_52] : memref<8x16x8xbf16, #tpu.memory_space<vmem>>, vector<8x16x8xbf16>
    %139 = arith.extf %138 : vector<8x16x8xbf16> to vector<8x16x8xf32>
    %140 = vector.shape_cast %135 : vector<8x8xf32> to vector<8x1x8xf32>
    %141 = vector.broadcast %140 : vector<8x1x8xf32> to vector<8x16x8xf32>
    %142 = arith.mulf %141, %139 : vector<8x16x8xf32>
    %cst_53 = arith.constant dense<0.000000e+00> : vector<8x16xf32>
    %143 = vector.multi_reduction <add>, %142, %cst_53 [2] : vector<8x16x8xf32> to vector<8x16xf32>
    %144 = arith.addf %137, %143 : vector<8x16xf32>
    %c0_54 = arith.constant 0 : index
    %c0_55 = arith.constant 0 : index
    %c0_56 = arith.constant 0 : index
    %145 = vector.load %arg9[%c0_54, %c0_55, %c0_56] : memref<1x8x16xf32, #tpu.memory_space<vmem>>, vector<1x8x16xf32>
    %146 = vector.shape_cast %145 : vector<1x8x16xf32> to vector<8x16xf32>
    %147 = vector.shape_cast %144 : vector<8x16xf32> to vector<1x8x16xf32>
    tpu.vector_store %arg9[%c0_54, %c0_55, %c0_56], %147 {strides = array<i32>} : memref<1x8x16xf32, #tpu.memory_space<vmem>>, vector<1x8x16xf32>,
    return
  }
  func.func @transform_0(%arg0: i32, %arg1: i32) -> (i32, i32, i32) {
    %c0_i32 = arith.constant 0 : i32
    %c0_i32_0 = arith.constant 0 : i32
    return %arg1, %arg0, %c0_i32 : i32, i32, i32
  }
  func.func @transform_1(%arg0: i32, %arg1: i32) -> (i32, i32) {
    %c0_i32 = arith.constant 0 : i32
    %c0_i32_0 = arith.constant 0 : i32
    %c0_i32_1 = arith.constant 0 : i32
    return %c0_i32, %c0_i32_0 : i32, i32
  }
  func.func @transform_2(%arg0: i32, %arg1: i32) -> (i32, i32) {
    %c0_i32 = arith.constant 0 : i32
    %c0_i32_0 = arith.constant 0 : i32
    %c0_i32_1 = arith.constant 0 : i32
    return %c0_i32, %c0_i32_0 : i32, i32
  }
  func.func @transform_3(%arg0: i32, %arg1: i32) -> (i32, i32, i32) {
    %c0_i32 = arith.constant 0 : i32
    %c0_i32_0 = arith.constant 0 : i32
    %c0_i32_1 = arith.constant 0 : i32
    return %arg1, %c0_i32, %c0_i32_0 : i32, i32, i32
  }
  func.func @transform_4(%arg0: i32, %arg1: i32) -> (i32, i32, i32) {
    %c0_i32 = arith.constant 0 : i32
    %c0_i32_0 = arith.constant 0 : i32
    %c0_i32_1 = arith.constant 0 : i32
    return %arg1, %c0_i32, %c0_i32_0 : i32, i32, i32
  }
  func.func @transform_5(%arg0: i32, %arg1: i32) -> (i32, i32, i32) {
    %c0_i32 = arith.constant 0 : i32
    %c0_i32_0 = arith.constant 0 : i32
    %c0_i32_1 = arith.constant 0 : i32
    return %arg0, %c0_i32, %c0_i32_0 : i32, i32, i32
  }
  func.func @transform_6(%arg0: i32, %arg1: i32) -> (i32, i32, i32) {
    %c0_i32 = arith.constant 0 : i32
    %c0_i32_0 = arith.constant 0 : i32
    %c0_i32_1 = arith.constant 0 : i32
    return %arg0, %c0_i32, %c0_i32_0 : i32, i32, i32
  }
  func.func @transform_7(%arg0: i32, %arg1: i32) -> (i32, i32, i32) {
    %c0_i32 = arith.constant 0 : i32
    %c0_i32_0 = arith.constant 0 : i32
    return %arg1, %arg0, %c0_i32 : i32, i32, i32
  }
}

</mosaic_0001>

<bundles_post_ra>
// kernel: tpu_custom_call.1
= control target key start
LH: loop header
LB: loop body
LE: loop exit
PB: predicated region body
PF: predicated region fallthrough
CT: control target
= control target key end

     0   :  { %12 = vsyncpa [#allocation3], 0  ;;  %s2644_s0 = inlined_call_operand.vmem [shape: f32[2,8,32], index: 0, kind: input, shape index: {}]   ;;  %s2645_s1 = inlined_call_operand.vmem [shape: f32[32,16], index: 1, kind: input, shape index: {}]   ;;  %s2646_s2 = inlined_call_operand.vmem [shape: f32[1,16], index: 2, kind: input, shape index: {}]   ;;  %s2647_s3 = inlined_call_operand.vmem [shape: bf16[2,8,16], index: 3, kind: input, shape index: {}]   ;;  %s2648_s4 = inlined_call_operand.vmem [shape: bf16[2,8,16], index: 4, kind: input, shape index: {}]   ;;  %s2649_s5 = inlined_call_operand.vmem [shape: bf16[8,16,8], index: 5, kind: input, shape index: {}]   ;;  %s2650_s6 = inlined_call_operand.vmem [shape: bf16[8,16,8], index: 6, kind: input, shape index: {}]   ;;  %s2651_s7 = inlined_call_operand.hbm [shape: f32[2,8,16], index: 7, kind: output, shape index: {}]  }
   0x1   :  { %14 = vsyncpa [#allocation3 + $0x1], 0  ;;  %s1866_s24 = smov 0   ;;  %s1868_s25 = smov 0  }
   0x2   :  { %s1870_s26 = smov 0   ;;  %s1872_s27 = smov 0  }
   0x3   :  { %s1874_s28 = smov 0   ;;  %s1876_s29 = smov 0  }
   0x4 LB: > { %s1543_s30 = sadd.s32 4294967295, %s1804_s29   ;;  %s1544_s8 = sadd.s32 4294967294, %s1804_s29   ;;  %s1804_s29 = sphi %s1876_s29, %s20_s29   ;;  %s1800_s28 = sphi %s1874_s28, %s2668_s28   ;;  %s1796_s27 = sphi %s1872_s27, %s2667_s27   ;;  %s1792_s26 = sphi %s1870_s26, %s2666_s26   ;;  %s1788_s25 = sphi %s1868_s25, %s2665_s25   ;;  %s1784_s24 = sphi %s1866_s24, %s2664_s24  }
   0x5   : > { %s29_s9 = sadd.s32 1, %s1800_s28  ;;  %s215_s10 = sadd.s32 1, %s1792_s26 }
   0x6   : > { %p30_p0 = scmp.ge.s32.totalorder %s29_s9, 2  ;;  %p225_p1 = scmp.ne.s32.totalorder %s1792_s26, %s1788_s25 }
   0x7   : > { %p226_p2 = scmp.eq.s32.totalorder %s1543_s30, 1  ;;  %p231_p3 = scmp.ne.s32.totalorder %s1788_s25, %s1784_s24 }
   0x8   : > { %s2670_s9 = smov (%p30_p0, %s29_s9), 0  ;;  %p232_p5 = scmp.eq.s32.totalorder %s1544_s8, 1 }
   0x9   : > { %p1906_p4 = por %p226_p2, %p225_p1  ;;  %s210_s12 = ssub.s32 %s1800_s28, %s2670_s9 }
   0xa   : > { %p1549_p6 = scmp.ge.s32.totalorder %s1804_s29, 1  ;;  %p213_p7 = scmp.eq.s32.totalorder %s210_s12, 0 }
   0xb   : > { %p1913_p8 = por %p232_p5, %p231_p3  ;;  %p300_p9 = scmp.lt.s32.totalorder %s1804_s29, 3 }
   0xc   : > { %s1919_s14 = scalar_select %p213_p7, %s1792_s26, %s215_s10  }
   0xd   : > { %p301_p10 = pnand %p1549_p6, %p300_p9 }
   0xe   : > { %p354_p11 = scmp.lt.s32.totalorder (!%p301_p10), %s1796_s27, 1  ;;  %s1559_s30 = sshll.u32 (!%p301_p10), %s1796_s27, 7 }
   0xf   : > { %304 = sbr.rel (%p301_p10) target bundleno = 976 (0x3d0), region = 48  ;;  %s2595_s17 = scalar_lea.hbm (!%p301_p10), %s2651_s7, %s1559_s30 }
  0x14   : > { %v388_v0 = vld [vmem:[%s2645_s1 + $0x18] sm:$0xff]  ;;  %v1806_v1 = vmov 0.0   ;;  %v387_v2 = vld [vmem:[%s2645_s1 + $0x10] sm:$0xff]  ;;  %vm1807_vm0 = vmmov 0   ;;  %s1930_s19 = scalar_select %p354_p11, %s1796_s27, 1  ;;  %v386_v3 = vld [vmem:[%s2645_s1 + $0x8] sm:$0xff] }
  0x15   : > { %1610 = vmatprep.subr.mxu0 %v1806_v1  ;;  %1618 = vmatprep.mubr.msk.f32.mxu0 %vm1807_vm0, %v1806_v1  ;;  %v385_v4 = vld [vmem:[%s2645_s1] sm:$0xff]  ;;  %vm396_vm1 = vcmask 261120   ;;  %vm526_vm2 = vcmask 130048   ;;  %v1808_v8 = vmov 2   ;;  %v1809_v9 = vmov 0  }
  0x16   : > { %1611 = vmatpush3.msra.mxu0 %v388_v0  ;;  %1621 = vmatprep.subr.bf16.mxu1 %v1806_v1  ;;  %s1551_s22 = sshll.u32 %s1930_s19, 3  ;;  %s1552_s15 = sshll.u32 %s1930_s19, 2  ;;  %v1554_v10 = vld [vmem:[%s2646_s2] ss:$0 sm:$0xff]  ;;  %v1810_v16 = vmov 3   ;;  %v1811_v17 = vmov 1  }
  0x17   : > { %1612 = vmatprep.subr.mxu0 %v1806_v1  ;;  %1623 = vmatprep.mubr.msk.bf16.mxu1 %vm1807_vm0, %v1806_v1  ;;  %s360_s12 = scalar_lea.vmem %s2644_s0, %s1551_s22  ;;  %s364_s18 = scalar_lea.vmem %s2647_s3, %s1552_s15  ;;  %v1812_v18 = vmov 4   ;;  %v1813_v19 = vmov 5   ;;  %v1814_v20 = vmov 6   ;;  %v1815_v21 = vmov 8   ;;  %v594_v30 = vld [vmem:[%s2649_s5] sm:$0x2] }
  0x18   : > { %1613 = vmatpush3.msra.mxu0 %v387_v2  ;;  %v384_v5 = vld [vmem:[%s360_s12] sm:$0xff]  ;;  %1709 = vset.pattern.permute.xlu1 %v1808_v8  ;;  %v1816_v22 = vmov 7   ;;  %v1817_v23 = vmov 11   ;;  %v1818_v24 = vmov 9   ;;  %v1819_v25 = vmov 14   ;;  %s368_s20 = scalar_lea.vmem %s2648_s4, %s1552_s15  ;;  %s351_s22 = sand.u32 1, %s1788_s25  }
  0x19   : > { %1614 = vmatprep.subr.mxu0 %v1806_v1  ;;  %v472_v6 = vld [vmem:[%s364_s18] sm:$0xf]  ;;  %1707 = vset.pattern.permute.xlu0 %v1809_v9  ;;  %v1820_v26 = vmov 10   ;;  %v1821_v27 = vmov 15   ;;  %v1822_v28 = vmov 12   ;;  %v1823_v29 = vmov 13  }
  0x1a   : > { %1615 = vmatpush3.msra.mxu0 %v386_v3  ;;  %v531_v7 = vsel %vm526_vm2, %v472_v6, 0  ;;  %v595_v31 = vld [vmem:[%s2649_s5 + $0x8] sm:$0x2]  ;;  %v602_v32 = vunpack.c.l.bf16 %v594_v30  ;;  %v475_v34 = vld [vmem:[%s2649_s5 + $0x8] sm:$0x1]  ;;  %vm504_vm3 = vcmask 1041409  }
  0x1b   : > { %1616 = vmatprep.subr.mxu0 %v1806_v1  ;;  %1622 = vmatpush3.bf16.xpose.msra.mxu1 %v531_v7  ;;  %v603_v33 = vunpack.c.l.bf16 %v595_v31  ;;  %v597_v35 = vld [vmem:[%s2649_s5 + $0x18] sm:$0x2]  ;;  %v476_v36 = vld [vmem:[%s2649_s5 + $0x10] sm:$0x1]  ;;  %v483_v37 = vunpack.c.l.bf16 %v475_v34  ;;  %v596_v38 = vld [vmem:[%s2649_s5 + $0x10] sm:$0x2] }
  0x1c   : > { %1617 = vmatpush3.msra.mxu0 %v385_v4  ;;  %v622_v39 = vrot.slane %v602_v32, 2  ;;  %v474_v41 = vld [vmem:[%s2649_s5] sm:$0x1]  ;;  %v598_v42 = vld [vmem:[%s2649_s5 + $0x20] sm:$0x2]  ;;  %v605_v43 = vunpack.c.l.bf16 %v597_v35  ;;  %v484_v45 = vunpack.c.l.bf16 %v476_v36  ;;  %v604_v46 = vunpack.c.l.bf16 %v596_v38  ;;  %s1550_s23 = sshll.u32 %s351_s22, 3 }
  0x1d   : > { %1619 = vmatmul.mubr.msk.f32.vlgmr.msra.gmra.mxu0 %vm396_vm1, %v384_v5  ;;  %1627 = vmatprep.subr.bf16.mxu0 %v1806_v1  ;;  %v623_v40 = vrot.slane %v603_v33, 1  ;;  %v477_v44 = vld [vmem:[%s2649_s5 + $0x18] sm:$0x1]  ;;  %v482_v47 = vunpack.c.l.bf16 %v474_v41  ;;  %v503_v48 = vrot.slane %v483_v37, 7  ;;  %vm507_vm4 = vcmask 1042434   ;;  %s353_s8 = scalar_lea.vmem [#allocation2], %s1550_s23 }
  0x1e   : > { %1629 = vmatprep.mubr.msk.bf16.mxu0 %vm1807_vm0, %v1806_v1  ;;  %v599_v50 = vld [vmem:[%s2649_s5 + $0x28] sm:$0x2]  ;;  %v606_v51 = vunpack.c.l.bf16 %v598_v42  ;;  %v478_v52 = vld [vmem:[%s2649_s5 + $0x20] sm:$0x1]  ;;  %v485_v53 = vunpack.c.l.bf16 %v477_v44  ;;  %v643_v54 = vrot.slane %v602_v32, 3  ;;  %v644_v55 = vrot.slane %v603_v33, 2 }
  0x1f   : > { %v624_v49 = vsel %vm504_vm3, %v623_v40, %v622_v39  ;;  %v626_v56 = vrot.slane %v605_v43, 7  ;;  %v506_v57 = vrot.slane %v484_v45, 6  ;;  %vm510_vm5 = vcmask 1043459   ;;  %v600_v60 = vld [vmem:[%s2649_s5 + $0x30] sm:$0x2]  ;;  %s1418_s10 = sshll.u32 %s353_s8, 4  ;;  %s2597_s10 = int_to_ptr.vmem [resolvable:$true] %s1418_s10 }
  0x20   : > { %v625_v58 = vsel %vm507_vm4, %v604_v46, %v624_v49  ;;  %v505_v59 = vsel %vm504_vm3, %v503_v48, %v482_v47  ;;  %v607_v61 = vunpack.c.l.bf16 %v599_v50  ;;  %v479_v62 = vld [vmem:[%s2649_s5 + $0x28] sm:$0x1]  ;;  %v486_v63 = vunpack.c.l.bf16 %v478_v52  ;;  %v601_v7 = vld [vmem:[%s2649_s5 + $0x38] sm:$0x2]  ;;  %v480_v9 = vld [vmem:[%s2649_s5 + $0x30] sm:$0x1] }
  0x21   : > { %v646_v0 = vrot.slane %v604_v46, 1  ;;  %v577_v1 = vrot.slane %v482_v47, 1  ;;  %v628_v2 = vrot.slane %v606_v51, 6  ;;  %v509_v3 = vrot.slane %v485_v53, 5  ;;  %v661_v30 = vld [vmem:[%s2649_s5 + $0x8] sm:$0x4] }
  0x22   : > { %v645_v4 = vsel %vm504_vm3, %v644_v55, %v643_v54  ;;  %vm513_vm6 = vcmask 1044484   ;;  %v627_v5 = vsel %vm510_vm5, %v626_v56, %v625_v58  ;;  %v508_v6 = vsel %vm507_vm4, %v506_v57, %v505_v59  ;;  %v662_v40 = vld [vmem:[%s2649_s5 + $0x10] sm:$0x4]  ;;  %v663_v48 = vld [vmem:[%s2649_s5 + $0x18] sm:$0x4]  ;;  %s1404_s27 = scalar_lea.sflag [#allocation3], %s351_s22 }
  0x23   : > { %v608_v8 = vunpack.c.l.bf16 %v600_v60  ;;  %vm516_vm7 = vcmask 1045509   ;;  %vm519_vm8 = vcmask 1046534   ;;  %vm522_vm9 = vcmask 1047559   ;;  %v666_v52 = vld [vmem:[%s2649_s5 + $0x30] sm:$0x4]  ;;  %s1728_s18 = scalar_lea.vmem %s2597_s10, 128 }
  0x24   : > { %v651_v32 = vrot.slane %v607_v61, 6  ;;  %v583_v33 = vrot.slane %v486_v63, 5  ;;  %v669_v42 = vunpack.c.l.bf16 %v661_v30  ;;  %v670_v54 = vunpack.c.l.bf16 %v662_v40  ;;  %v2053_v57 = vld [vmem:[%s2649_s5 + $0x20] sm:$0x4]  ;;  %v2118_v40 = vld [vmem:[%s2649_s5 + $0x4] sm:$0x2]  ;;  %p1729_p12 = scmp.ne.s32.totalorder %s2597_s10, %s1728_s18 }
  0x25   : > { %vm1056_vm10 = vcmask 64512   ;;  %vm1358_vm11 = vcmask 1043456   ;;  %vm1282_vm12 = vcmask 130112  }
  0x26   : > { %v689_v59 = vrot.slane %v669_v42, 3  ;;  %p1730_p13 = pnand %p1729_p12, %p1906_p4 }
  0x28   : > { %p1731_p0 = pneg %p1730_p13 }
  0xdd   : > { %v466_v11 = vpop.f32.mrf.mxu0 }
  0xde   : > { %v467_v12 = vadd.f32 %v1554_v10, %v466_v11  ;;  %v487_v10 = vunpack.c.l.bf16 %v479_v62  ;;  %v579_v11 = vrot.slane %v484_v45, 7 }
  0xdf   : > { %v1620_v13 = vpop.f32.mrf.mxu0 }
  0xe0   : > { %v470_v14 = vmul.f32 0.25, %v467_v12  ;;  %v630_v12 = vrot.slane %v607_v61, 5  ;;  %v512_v13 = vrot.slane %v486_v63, 4  ;;  %v585_v44 = vrot.slane %v487_v10, 4 }
  0xe1   : > { %v710_v63 = vrot.slane %v669_v42, 4 }
  0xe2   : > { %611 = vperm.xlu1 %1709, %v470_v14   ;;  %492 = vperm.xlu0 %1707, %v470_v14   ;;  %v471_v15 = vpack.c.bf16 %v470_v14, %v470_v14 }
  0xe4   : > { %1624 = vmatmul.mubr.msk.bf16.vlgmr.msra.gmra.mxu1 %vm526_vm2, %v471_v15  ;;  %v578_v15 = vsel %vm504_vm3, %v483_v37, %v577_v1  ;;  %v727_v1 = vld [vmem:[%s2649_s5 + $0x8] sm:$0x8] }
  0xe6   : > { %1710 = vset.pattern.permute.xlu1 %v1810_v16  ;;  %1708 = vset.pattern.permute.xlu0 %v1811_v17  ;;  %v629_v16 = vsel %vm513_vm6, %v628_v2, %v627_v5  ;;  %v511_v17 = vsel %vm510_vm5, %v509_v3, %v508_v6  ;;  %v671_v2 = vunpack.c.l.bf16 %v663_v48  ;;  %v2067_v6 = vld [vmem:[%s2649_s5 + $0xc] sm:$0x1] }
  0xe7   : > { %640 = vperm.xlu1 %1710, %v470_v14   ;;  %574 = vperm.xlu0 %1708, %v470_v14  }
  0xeb   : > { %1711 = vset.pattern.permute.xlu1 %v1812_v18  ;;  %1712 = vset.pattern.permute.xlu0 %v1813_v19  ;;  %v609_v18 = vunpack.c.l.bf16 %v601_v7  ;;  %v481_v19 = vld [vmem:[%s2649_s5 + $0x38] sm:$0x1] }
  0xec   : > { %677 = vperm.xlu1 %1711, %v470_v14   ;;  %706 = vperm.xlu0 %1712, %v470_v14   ;;  %v489_v31 = vunpack.c.l.bf16 %v481_v19  ;;  %v2085_v19 = vld [vmem:[%s2649_s5 + $0x14] sm:$0x1] }
  0xed   : > { %v634_v34 = vrot.slane %v609_v18, 3  ;;  %v655_v55 = vrot.slane %v609_v18, 4 }
  0xee   : > { %v521_v45 = vrot.slane %v489_v31, 1 }
  0xf0   : > { %1713 = vset.pattern.permute.xlu1 %v1814_v20  ;;  %1715 = vset.pattern.permute.xlu0 %v1815_v21  ;;  %v488_v20 = vunpack.c.l.bf16 %v480_v9  ;;  %v649_v21 = vrot.slane %v606_v51, 7  ;;  %v2042_v51 = vld [vmem:[%s2649_s5 + $0x28] sm:$0x4]  ;;  %v672_v9 = vunpack.c.l.bf16 %v2053_v57 }
  0xf1   : > { %743 = vperm.xlu1 %1713, %v470_v14   ;;  %809 = vperm.xlu0 %1715, %v470_v14   ;;  %v673_v3 = vunpack.c.l.bf16 %v2042_v51  ;;  %v2215_v51 = vld [vmem:[%s2649_s5 + $0x3c] sm:$0x1] }
  0xf2   : > { %v518_v35 = vrot.slane %v488_v20, 2  ;;  %v587_v56 = vrot.slane %v488_v20, 3  ;;  %v801_v20 = vunpack.c.l.bf16 %v2067_v6  ;;  %v2246_v6 = vld [vmem:[%s2649_s5 + $0x34] sm:$0x2] }
  0xf5   : > { %1714 = vset.pattern.permute.xlu1 %v1816_v22  ;;  %1718 = vset.pattern.permute.xlu0 %v1817_v23  ;;  %v581_v22 = vrot.slane %v485_v53, 6  ;;  %v632_v23 = vrot.slane %v608_v8, 4  ;;  %v667_v53 = vld [vmem:[%s2649_s5 + $0x38] sm:$0x4] }
  0xf6   : > { %772 = vperm.xlu1 %1714, %v470_v14   ;;  %904 = vperm.xlu0 %1718, %v470_v14   ;;  %v675_v5 = vunpack.c.l.bf16 %v667_v53  ;;  %v2137_v53 = vld [vmem:[%s2649_s5 + $0x24] sm:$0x1] }
  0xfa   : > { %1716 = vset.pattern.permute.xlu1 %v1818_v24  ;;  %1721 = vset.pattern.permute.xlu0 %v1819_v25  ;;  %v515_v24 = vrot.slane %v487_v10, 3  ;;  %v691_v10 = vrot.slane %v670_v54, 2 }
  0xfb   : > { %838 = vperm.xlu1 %1716, %v470_v14   ;;  %1007 = vperm.xlu0 %1721, %v470_v14  }
  0xff   : > { %1717 = vset.pattern.permute.xlu1 %v1820_v26  ;;  %1723 = vset.pattern.permute.xlu0 %v1821_v27  ;;  %v580_v26 = vsel %vm507_vm4, %v579_v11, %v578_v15  ;;  %v735_v15 = vunpack.c.l.bf16 %v727_v1 }
 0x100   : > { %875 = vperm.xlu1 %1717, %v470_v14   ;;  %v582_v37 = vsel %vm510_vm5, %v581_v22, %v580_v26  ;;  %v696_v22 = vrot.slane %v673_v3, 7 }
 0x101   : > { %v584_v47 = vsel %vm513_vm6, %v583_v33, %v582_v37  ;;  %v755_v33 = vrot.slane %v735_v15, 5 }
 0x102   : > { %v586_v61 = vsel %vm516_vm7, %v585_v44, %v584_v47 }
 0x104   : > { %1719 = vset.pattern.permute.xlu1 %v1822_v28  ;;  %v514_v28 = vsel %vm513_vm6, %v512_v13, %v511_v17  ;;  %v728_v13 = vld [vmem:[%s2649_s5 + $0x10] sm:$0x8]  ;;  %v588_v17 = vsel %vm519_vm8, %v587_v56, %v586_v61 }
 0x105   : > { %941 = vperm.xlu1 %1719, %v470_v14   ;;  %v517_v39 = vsel %vm516_vm7, %v515_v24, %v514_v28  ;;  %v2092_v24 = vrot.slane %v675_v5, 5  ;;  %v716_v28 = vrot.slane %v672_v9, 1  ;;  %v736_v30 = vunpack.c.l.bf16 %v728_v13 }
 0x106   : > { %v520_v50 = vsel %vm519_vm8, %v518_v35, %v517_v39  ;;  %v802_v35 = vunpack.c.l.bf16 %v2085_v19  ;;  %v820_v39 = vrot.slane %v801_v20, 7 }
 0x107   : > { %v2070_v7 = vsel %vm522_vm9, %v521_v45, %v520_v50  ;;  %v2132_v50 = vrot.slane %v675_v5, 6  ;;  %v804_v5 = vunpack.c.l.bf16 %v2137_v53 }
 0x108   : > { %v822_v57 = vrot.slane %v802_v35, 6 }
 0x109   : > { %1720 = vset.pattern.permute.xlu1 %v1823_v29  ;;  %v660_v29 = vld [vmem:[%s2649_s5] sm:$0x4] }
 0x10a   : > { %970 = vperm.xlu1 %1720, %v470_v14   ;;  %v668_v41 = vunpack.c.l.bf16 %v660_v29  ;;  %v729_v29 = vld [vmem:[%s2649_s5 + $0x18] sm:$0x8] }
 0x10b   : > { %v737_v44 = vunpack.c.l.bf16 %v729_v29 }
 0x10c   : > { %v688_v58 = vrot.slane %v668_v41, 4  ;;  %v709_v62 = vrot.slane %v668_v41, 5  ;;  %v2123_v41 = vld [vmem:[%s2649_s5 + $0xc] sm:$0x2] }
 0x10e   : > { %1722 = vset.pattern.permute.xlu1 %v1821_v27  ;;  %v631_v27 = vsel %vm516_vm7, %v630_v12, %v629_v16  ;;  %v690_v11 = vsel %vm504_vm3, %v689_v59, %v688_v58  ;;  %v712_v12 = vrot.slane %v670_v54, 3  ;;  %v711_v18 = vsel %vm504_vm3, %v710_v63, %v709_v62  ;;  %v2149_v58 = vld [vmem:[%s2649_s5 + $0x14] sm:$0x2] }
 0x10f   : > { %1036 = vperm.xlu1 %1722, %v470_v14   ;;  %v647_v14 = vsel %vm507_vm4, %v646_v0, %v645_v4  ;;  %v633_v38 = vsel %vm519_vm8, %v632_v23, %v631_v27  ;;  %v726_v0 = vld [vmem:[%s2649_s5] sm:$0x8]  ;;  %v674_v4 = vunpack.c.l.bf16 %v666_v52  ;;  %v692_v26 = vsel %vm507_vm4, %v691_v10, %v690_v11 }
 0x110   : > { %v648_v25 = vsel %vm510_vm5, %v605_v43, %v647_v14  ;;  %v653_v43 = vrot.slane %v608_v8, 5  ;;  %v2036_v49 = vsel %vm522_vm9, %v634_v34, %v633_v38  ;;  %v589_v8 = vrot.slane %v489_v31, 2  ;;  %v2105_v34 = vld [vmem:[%s2649_s5 + $0x1c] sm:$0x1] }
 0x111   : > { %v650_v36 = vsel %vm513_vm6, %v649_v21, %v648_v25  ;;  %v734_v14 = vunpack.c.l.bf16 %v726_v0  ;;  %v693_v21 = vrot.slane %v671_v2, 1  ;;  %v2090_v23 = vrot.slane %v674_v4, 6  ;;  %v792_v25 = vld [vmem:[%s2649_s5 + $0x4] sm:$0x1] }
 0x112   : > { %v652_v46 = vsel %vm516_vm7, %v651_v32, %v650_v36  ;;  %v714_v27 = vrot.slane %v671_v2, 2  ;;  %v713_v31 = vsel %vm507_vm4, %v712_v12, %v711_v18  ;;  %v2109_v36 = vsel %vm522_vm9, %v589_v8, %v588_v17 }
 0x113   : > { %v654_v60 = vsel %vm519_vm8, %v653_v43, %v652_v46  ;;  %v754_v32 = vrot.slane %v734_v14, 6  ;;  %v2111_v37 = vrot.slane %v674_v4, 7  ;;  %v800_v38 = vunpack.c.l.bf16 %v792_v25  ;;  %v730_v43 = vld [vmem:[%s2649_s5 + $0x20] sm:$0x8]  ;;  %v2159_v4 = vld [vmem:[%s2649_s5 + $0x2c] sm:$0x1] }
 0x114   : > { %v2078_v16 = vsel %vm522_vm9, %v655_v55, %v654_v60  ;;  %v694_v42 = vsel %vm510_vm5, %v693_v21, %v692_v26  ;;  %v775_v45 = vrot.slane %v734_v14, 7  ;;  %v776_v46 = vrot.slane %v735_v15, 6  ;;  %v731_v55 = vld [vmem:[%s2649_s5 + $0x28] sm:$0x8] }
 0x115   : > { %v715_v48 = vsel %vm510_vm5, %v714_v27, %v713_v31  ;;  %v757_v52 = vrot.slane %v736_v30, 4  ;;  %v803_v54 = vunpack.c.l.bf16 %v2105_v34  ;;  %v756_v56 = vsel %vm504_vm3, %v755_v33, %v754_v32  ;;  %v2183_v27 = vld [vmem:[%s2649_s5 + $0x34] sm:$0x1]  ;;  %v2263_v34 = vld [vmem:[%s2649_s5 + $0x3c] sm:$0x2] }
 0x116   : > { %v866_v59 = vunpack.c.l.bf16 %v2118_v40  ;;  %v867_v60 = vunpack.c.l.bf16 %v2123_v41  ;;  %v695_v61 = vsel %vm513_vm6, %v672_v9, %v694_v42  ;;  %v738_v62 = vunpack.c.l.bf16 %v730_v43  ;;  %v2166_v9 = vld [vmem:[%s2649_s5 + $0x30] sm:$0x8] }
 0x117   : > { %v821_v63 = vsel %vm504_vm3, %v820_v39, %v800_v38  ;;  %v778_v0 = vrot.slane %v736_v30, 5  ;;  %v717_v1 = vsel %vm513_vm6, %v716_v28, %v715_v48  ;;  %v759_v2 = vrot.slane %v737_v44, 3 }
 0x118   : > { %v777_v8 = vsel %vm504_vm3, %v776_v46, %v775_v45  ;;  %v739_v10 = vunpack.c.l.bf16 %v731_v55  ;;  %v758_v11 = vsel %vm507_vm4, %v757_v52, %v756_v56  ;;  %v824_v12 = vrot.slane %v803_v54, 5  ;;  %v2210_v46 = vld [vmem:[%s2649_s5 + $0x38] sm:$0x8] }
 0x119   : > { %v868_v13 = vunpack.c.l.bf16 %v2149_v58  ;;  %v823_v14 = vsel %vm507_vm4, %v822_v57, %v821_v63  ;;  %v780_v15 = vrot.slane %v737_v44, 4  ;;  %v907_v17 = vrot.slane %v866_v59, 3  ;;  %v2203_v44 = vld [vmem:[%s2649_s5 + $0x1c] sm:$0x2]  ;;  %v2224_v57 = vld [vmem:[%s2649_s5 + $0x2c] sm:$0x2] }
 0x11a   : > { %v908_v18 = vrot.slane %v867_v60, 2  ;;  %v697_v25 = vsel %vm516_vm7, %v696_v22, %v695_v61  ;;  %v761_v26 = vrot.slane %v738_v62, 2  ;;  %v805_v28 = vunpack.c.l.bf16 %v2159_v4  ;;  %v2194_v22 = vld [vmem:[%s2649_s5 + $0x24] sm:$0x2] }
 0x11b   : > { %v779_v29 = vsel %vm507_vm4, %v778_v0, %v777_v8  ;;  %v740_v30 = vunpack.c.l.bf16 %v2166_v9  ;;  %v760_v31 = vsel %vm510_vm5, %v759_v2, %v758_v11  ;;  %v826_v32 = vrot.slane %v804_v5, 4 }
 0x11c   : > { %v841_v33 = vrot.slane %v800_v38, 1  ;;  %v718_v39 = vsel %vm516_vm7, %v673_v3, %v717_v1  ;;  %v825_v42 = vsel %vm510_vm5, %v824_v12, %v823_v14  ;;  %v782_v43 = vrot.slane %v738_v62, 3 }
 0x11d   : > { %v910_v45 = vrot.slane %v868_v13, 1  ;;  %v763_v38 = vrot.slane %v739_v10, 1  ;;  %v806_v3 = vunpack.c.l.bf16 %v2183_v27  ;;  %v781_v48 = vsel %vm510_vm5, %v780_v15, %v779_v29 }
 0x11e   : > { %v909_v52 = vsel %vm504_vm3, %v908_v18, %v907_v17  ;;  %v762_v55 = vsel %vm513_vm6, %v761_v26, %v760_v31  ;;  %v828_v56 = vrot.slane %v805_v28, 3  ;;  %v870_v61 = vunpack.c.l.bf16 %v2194_v22 }
 0x11f   : > { %v843_v62 = vrot.slane %v802_v35, 7  ;;  %v827_v63 = vsel %vm513_vm6, %v826_v32, %v825_v42  ;;  %v784_v0 = vrot.slane %v739_v10, 2  ;;  %v869_v1 = vunpack.c.l.bf16 %v2203_v44  ;;  %v2271_v32 = vld [vmem:[%s2649_s5 + $0x4] sm:$0x8] }
 0x120   : > { %v842_v2 = vsel %vm504_vm3, %v801_v20, %v841_v33  ;;  %v741_v8 = vunpack.c.l.bf16 %v2210_v46  ;;  %v807_v9 = vunpack.c.l.bf16 %v2215_v51  ;;  %v783_v11 = vsel %vm513_vm6, %v782_v43, %v781_v48  ;;  %v927_v51 = vld [vmem:[%s2649_s5 + $0x1c] sm:$0x4] }
 0x121   : > { %v911_v19 = vsel %vm507_vm4, %v910_v45, %v909_v52  ;;  %v764_v35 = vsel %vm516_vm7, %v763_v38, %v762_v55  ;;  %v830_v10 = vrot.slane %v806_v3, 2  ;;  %v871_v20 = vunpack.c.l.bf16 %v2224_v57  ;;  %v2303_v52 = vld [vmem:[%s2649_s5 + $0x14] sm:$0x8] }
 0x122   : > { %v845_v12 = vrot.slane %v803_v54, 6  ;;  %v829_v14 = vsel %vm516_vm7, %v828_v56, %v827_v63  ;;  %v786_v15 = vrot.slane %v740_v30, 1  ;;  %v913_v17 = vrot.slane %v870_v61, 7  ;;  %v925_v63 = vld [vmem:[%s2649_s5 + $0xc] sm:$0x4] }
 0x123   : > { %v844_v18 = vsel %vm507_vm4, %v843_v62, %v842_v2  ;;  %v699_v26 = vsel %vm519_vm8, %v2090_v23, %v697_v25  ;;  %v720_v29 = vsel %vm519_vm8, %v2111_v37, %v718_v39  ;;  %v785_v31 = vsel %vm516_vm7, %v784_v0, %v783_v11  ;;  %v2281_v39 = vld [vmem:[%s2649_s5 + $0xc] sm:$0x8] }
 0x124   : > { %v912_v54 = vsel %vm510_vm5, %v869_v1, %v911_v19  ;;  %v766_v23 = vrot.slane %v741_v8, 7  ;;  %v832_v37 = vrot.slane %v807_v9, 1  ;;  %v2653_v25 = vunpack.c.l.bf16 %v2246_v6 }
 0x125   : > { %v847_v33 = vrot.slane %v804_v5, 5  ;;  %v765_v42 = vsel %vm519_vm8, %v740_v30, %v764_v35  ;;  %v831_v43 = vsel %vm519_vm8, %v830_v10, %v829_v14  ;;  %v915_v45 = vrot.slane %v871_v20, 6  ;;  %v2326_v35 = vld [vmem:[%s2649_s5 + $0x1c] sm:$0x8]  ;;  %v2335_v14 = vld [vmem:[%s2649_s5 + $0x24] sm:$0x8] }
 0x126   : > { %v846_v46 = vsel %vm510_vm5, %v845_v12, %v844_v18  ;;  %v2290_v38 = vsel %vm522_vm9, %v2092_v24, %v699_v26  ;;  %v2294_v53 = vsel %vm522_vm9, %v2132_v50, %v720_v29  ;;  %v787_v48 = vsel %vm519_vm8, %v786_v15, %v785_v31  ;;  %v924_v50 = vld [vmem:[%s2649_s5 + $0x4] sm:$0x4]  ;;  %v2340_v15 = vld [vmem:[%s2649_s5 + $0x2c] sm:$0x8]  ;;  %v2351_v26 = vld [vmem:[%s2649_s5 + $0x34] sm:$0x8] }
 0x127   : > { %v914_v30 = vsel %vm513_vm6, %v913_v17, %v912_v54  ;;  %v2652_v55 = vunpack.c.l.bf16 %v2263_v34  ;;  %v849_v56 = vrot.slane %v805_v28, 4  ;;  %v998_v24 = vunpack.c.l.bf16 %v2271_v32  ;;  %v926_v31 = vld [vmem:[%s2649_s5 + $0x14] sm:$0x4] }
 0x128   : > { %v999_v62 = vunpack.c.l.bf16 %v2281_v39  ;;  %v2315_v2 = vsel %vm522_vm9, %v766_v23, %v765_v42  ;;  %v2318_v11 = vsel %vm522_vm9, %v832_v37, %v831_v43  ;;  %v917_v28 = vrot.slane %v2653_v25, 5 }
 0x129   : > { %v848_v19 = vsel %vm513_vm6, %v847_v33, %v846_v46  ;;  %v2329_v10 = vsel %vm522_vm9, %v741_v8, %v787_v48  ;;  %v916_v12 = vsel %vm516_vm7, %v915_v45, %v914_v30  ;;  %v886_v17 = vrot.slane %v866_v59, 2  ;;  %v2378_v33 = vld [vmem:[%s2649_s5 + $0x3c] sm:$0x8] }
 0x12a   : > { %v887_v18 = vrot.slane %v867_v60, 1  ;;  %v851_v8 = vrot.slane %v806_v3, 3  ;;  %v1000_v29 = vunpack.c.l.bf16 %v2303_v52  ;;  %v932_v54 = vunpack.c.l.bf16 %v924_v50 }
 0x12b   : > { %v933_v40 = vunpack.c.l.bf16 %v925_v63  ;;  %v2359_v41 = vrot.slane %v2652_v55, 4  ;;  %v850_v59 = vsel %vm516_vm7, %v849_v56, %v848_v19  ;;  %v1018_v60 = vrot.slane %v998_v24, 6 }
 0x12c   : > { %v1019_v27 = vrot.slane %v999_v62, 5  ;;  %v2369_v23 = vsel %vm519_vm8, %v917_v28, %v916_v12  ;;  %v2373_v37 = vrot.slane %v807_v9, 2  ;;  %v1001_v42 = vunpack.c.l.bf16 %v2326_v35 }
 0x12d   : > { %v1002_v43 = vunpack.c.l.bf16 %v2335_v14  ;;  %v888_v48 = vsel %vm504_vm3, %v887_v18, %v886_v17  ;;  %v934_v9 = vunpack.c.l.bf16 %v926_v31  ;;  %v2389_v56 = vsel %vm519_vm8, %v851_v8, %v850_v59 }
 0x12e   : > { %v1021_v50 = vrot.slane %v1000_v29, 4  ;;  %v952_v63 = vrot.slane %v932_v54, 4  ;;  %v953_v28 = vrot.slane %v933_v40, 3  ;;  %v1020_v17 = vsel %vm504_vm3, %v1019_v27, %v1018_v60  ;;  %v928_v60 = vld [vmem:[%s2649_s5 + $0x24] sm:$0x4] }
 0x12f   : > { %v890_v18 = vrot.slane %v869_v1, 7  ;;  %v889_v31 = vsel %vm507_vm4, %v868_v13, %v888_v48  ;;  %v935_v8 = vunpack.c.l.bf16 %v927_v51  ;;  %v973_v59 = vrot.slane %v932_v54, 5  ;;  %v2423_v27 = vld [vmem:[%s2649_s5 + $0x2c] sm:$0x4] }
 0x130   : > { %v974_v46 = vrot.slane %v933_v40, 4  ;;  %v1022_v44 = vsel %vm507_vm4, %v1021_v50, %v1020_v17  ;;  %v2409_v58 = vrot.slane %v1002_v43, 2  ;;  %v892_v13 = vrot.slane %v870_v61, 6 }
 0x131   : > { %v954_v1 = vsel %vm504_vm3, %v953_v28, %v952_v63  ;;  %v891_v40 = vsel %vm510_vm5, %v890_v18, %v889_v31  ;;  %v957_v61 = vrot.slane %v935_v8, 1  ;;  %v1039_v51 = vrot.slane %v998_v24, 7 }
 0x132   : > { %v975_v48 = vsel %vm504_vm3, %v974_v46, %v973_v59  ;;  %v894_v50 = vrot.slane %v871_v20, 5  ;;  %v893_v32 = vsel %vm513_vm6, %v892_v13, %v891_v40  ;;  %v936_v24 = vunpack.c.l.bf16 %v928_v60 }
 0x133   : > { %v937_v39 = vunpack.c.l.bf16 %v2423_v27  ;;  %v1042_v57 = vrot.slane %v1000_v29, 5 }
 0x15d   : > { %v2129_v47 = vpop.permute.xlu1 %611  ;;  %v493_v0 = vpop.permute.xlu0 %492 }
 0x15e   : > { %v525_v19 = vmul.f32 %v2070_v7, %v493_v0  ;;  %v1023_v7 = vrot.slane %v1001_v42, 3  ;;  %v955_v0 = vrot.slane %v934_v9, 2 }
 0x160   : > { %v1024_v29 = vsel %vm510_vm5, %v1023_v7, %v1022_v44 }
 0x162   : > { %v2177_v21 = vpop.permute.xlu1 %640  ;;  %v575_v30 = vpop.permute.xlu0 %574 }
 0x163   : > { %v592_v55 = vmul.f32 %v2109_v36, %v575_v30  ;;  %v637_v36 = vmul.f32 %v2036_v49, %v2129_v47  ;;  %v1040_v49 = vrot.slane %v999_v62, 6  ;;  %v658_v30 = vmul.f32 %v2078_v16, %v2177_v21 }
 0x164   : > { %v978_v62 = vrot.slane %v935_v8, 2 }
 0x165   : > { %v1041_v59 = vsel %vm504_vm3, %v1040_v49, %v1039_v51 }
 0x167   : > { %v2234_v4 = vpop.permute.xlu1 %677  ;;  %v707_v63 = vpop.permute.xlu0 %706 }
 0x168   : > { %v703_v16 = vmul.f32 %v2290_v38, %v2234_v4  ;;  %v724_v8 = vmul.f32 %v2294_v53, %v707_v63  ;;  %v931_v4 = vld [vmem:[%s2649_s5 + $0x3c] sm:$0x4]  ;;  %v980_v38 = vrot.slane %v936_v24, 1 }
 0x169   : > { %v939_v44 = vunpack.c.l.bf16 %v931_v4 }
 0x16c   : > { %v2296_v5 = vpop.permute.xlu1 %743  ;;  %v810_v60 = vpop.permute.xlu0 %809 }
 0x171   : > { %v2366_v3 = vpop.permute.xlu1 %772 }
 0x172   : > { %v790_v35 = vmul.f32 %v2329_v10, %v2366_v3  ;;  %v835_v10 = vmul.f32 %v2318_v11, %v810_v60  ;;  %v1026_v3 = vsel %vm513_vm6, %v2409_v58, %v1024_v29  ;;  %v920_v58 = vsel %vm522_vm9, %v2359_v41, %v2369_v23 }
 0x176   : > { %v2404_v25 = vpop.permute.xlu1 %838 }
 0x17b   : > { %v876_v17 = vpop.permute.xlu1 %875 }
 0x180   : > { %v942_v49 = vpop.permute.xlu1 %941 }
 0x1a4   : > { %v567_v45 = vpop.f32.mrf.mxu1 }
 0x1a5   : > { %v568_v12 = vadd.f32 %v567_v45, %v525_v19  ;;  %v976_v45 = vrot.slane %v934_v9, 3  ;;  %v956_v9 = vsel %vm507_vm4, %v955_v0, %v954_v1  ;;  %v2656_v19 = vunpack.c.l.bf16 %v2246_v6 }
 0x1a6   : > { %v1625_v54 = vpop.f32.mrf.mxu1  ;;  %v958_v31 = vsel %vm510_vm5, %v957_v61, %v956_v9  ;;  %v895_v0 = vsel %vm516_vm7, %v894_v50, %v893_v32  ;;  %v960_v6 = vrot.slane %v937_v39, 7  ;;  %v1044_v1 = vrot.slane %v1001_v42, 4  ;;  %v905_v32 = vpop.permute.xlu0 %904 }
 0x1a7   : > { %v593_v22 = vadd.f32 %v592_v55, %v568_v12  ;;  %v930_v55 = vld [vmem:[%s2649_s5 + $0x34] sm:$0x4]  ;;  %v977_v21 = vsel %vm507_vm4, %v976_v45, %v975_v48  ;;  %v896_v12 = vrot.slane %v2656_v19, 4  ;;  %v769_v54 = vmul.f32 %v2315_v2, %v2296_v5  ;;  %v971_v19 = vpop.permute.xlu1 %970 }
 0x1a8   : > { %v570_v47 = vpop.f32.mrf.mxu1  ;;  %v938_v18 = vunpack.c.l.bf16 %v930_v55  ;;  %v979_v13 = vsel %vm510_vm5, %v978_v62, %v977_v21  ;;  %v959_v53 = vsel %vm513_vm6, %v936_v24, %v958_v31  ;;  %v2657_v45 = vunpack.c.l.bf16 %v2263_v34 }
 0x1a9   : > { %v638_v46 = vadd.f32 %v637_v36, %v593_v22  ;;  %v1043_v36 = vsel %vm507_vm4, %v1042_v57, %v1041_v59  ;;  %v897_v27 = vsel %vm519_vm8, %v896_v12, %v895_v0  ;;  %v981_v42 = vsel %vm513_vm6, %v980_v38, %v979_v13 }
 0x1aa   : > { %v1626_v28 = vpop.f32.mrf.mxu1  ;;  %v898_v7 = vrot.slane %v2657_v45, 3  ;;  %v962_v22 = vrot.slane %v938_v18, 6  ;;  %v1046_v5 = vrot.slane %v1002_v43, 3  ;;  %v854_v61 = vsel %vm522_vm9, %v2373_v37, %v2389_v56  ;;  %v1008_v38 = vpop.permute.xlu0 %1007 }
 0x1ab   : > { %v659_v20 = vadd.f32 %v658_v30, %v638_v46  ;;  %v2658_v48 = vunpack.c.l.bf16 %v2340_v15  ;;  %v961_v34 = vsel %vm516_vm7, %v960_v6, %v959_v53  ;;  %v1045_v47 = vsel %vm510_vm5, %v1044_v1, %v1043_v36  ;;  %v1037_v1 = vpop.permute.xlu1 %1036 }
 0x1ac   : > { %v983_v14 = vrot.slane %v938_v18, 7  ;;  %v899_v30 = vsel %vm522_vm9, %v898_v7, %v897_v27  ;;  %v964_v50 = vrot.slane %v939_v44, 5  ;;  %v982_v37 = vsel %vm516_vm7, %v937_v39, %v981_v42 }
 0x1ad   : > { %v704_v52 = vadd.f32 %v703_v16, %v659_v20  ;;  %v1027_v51 = vrot.slane %v2658_v48, 1  ;;  %v2659_v56 = vmov %v2658_v48  ;;  %v856_v9 = vmul.f32 %v854_v61, %v2404_v25 }
 0x1ae   : > { %v1048_v55 = vrot.slane %v2659_v56, 2  ;;  %v963_v46 = vsel %vm519_vm8, %v962_v22, %v961_v34  ;;  %v1047_v63 = vsel %vm513_vm6, %v1046_v5, %v1045_v47  ;;  %v985_v62 = vrot.slane %v939_v44, 6  ;;  %v473_v22 = vld [vmem:[%s368_s20] sm:$0xf]  ;;  %s1825_s20 = smov [#allocation2]  }
 0x1af   : > { %v725_v40 = vadd.f32 %v724_v8, %v704_v52  ;;  %v1028_v24 = vsel %vm516_vm7, %v1027_v51, %v1026_v3  ;;  %v901_v28 = vmul.f32 %v899_v30, %v876_v17  ;;  %v984_v39 = vsel %vm519_vm8, %v983_v14, %v982_v37  ;;  %v1594_v30 = vld [vmem:[%s2650_s6 + $0x8] sm:$0xff]   ;;  %s1732_s19 = sshll.u32 %s1825_s20, 4  ;;  %s1733_s19 = int_to_ptr.vmem [resolvable:$false] %s1732_s19 }
 0x1b0   : > { %v2660_v15 = vunpack.c.l.bf16 %v2351_v26  ;;  %v2661_v21 = vunpack.c.l.bf16 %v2378_v33  ;;  %v965_v20 = vsel %vm522_vm9, %v964_v50, %v963_v46  ;;  %v1049_v12 = vsel %vm516_vm7, %v1048_v55, %v1047_v63  ;;  %s1734_s21 = scalar_lea.vmem %s1733_s19, 256  ;;  %p1735_p1 = scmp.lt.s32.totalorder %s2597_s10, %s1733_s19 }
 0x1b1   : > { %v770_v2 = vadd.f32 %v769_v54, %v725_v40  ;;  %v922_v41 = vmul.f32 %v920_v58, %v905_v32  ;;  %v986_v31 = vsel %vm522_vm9, %v985_v62, %v984_v39  ;;  %v967_v59 = vmul.f32 %v965_v20, %v942_v49  ;;  %p1736_p2 = scmp.lt.s32.totalorder %s1734_s21, %s1728_s18 }
 0x1b2   : > { %v1050_v16 = vrot.slane %v2660_v15, 1  ;;  %v1030_v57 = vrot.slane %v2661_v21, 7  ;;  %v2662_v23 = vmov %v2660_v15  ;;  %v988_v52 = vmul.f32 %v986_v31, %v971_v19 }
 0x1b3   : > { %v791_v43 = vadd.f32 %v790_v35, %v770_v2  ;;  %v1029_v18 = vsel %vm519_vm8, %v2662_v23, %v1028_v24  ;;  %v2663_v6 = vmov %v2661_v21  ;;  %v1360_v35 = vsel %vm1358_vm11, %v473_v22, 0  ;;  %v1595_v24 = vld [vmem:[%s2650_s6 + $0x10] sm:$0xff]   ;;  %p1737_p3 = por %p1736_p2, %p1735_p1 }
 0x1b4   : > { %v1051_v8 = vsel %vm519_vm8, %v1050_v16, %v1049_v12  ;;  %v1031_v4 = vsel %vm522_vm9, %v1030_v57, %v1029_v18  ;;  %1628 = vmatpush3.bf16.msra.mxu0 %v1360_v35  ;;  %v1824_v5 = vmov 1966171168   ;;  %v1106_v61 = vlaneseq  ;;  %v1597_v57 = vld [vmem:[%s2650_s6 + $0x20] sm:$0xff]  }
 0x1b5   : > { %v836_v11 = vadd.f32 %v835_v10, %v791_v43  ;;  %v1052_v13 = vsel %vm522_vm9, %v2663_v6, %v1051_v8  ;;  %v1033_v26 = vmul.f32 %v1031_v4, %v1008_v38  ;;  %v1104_v2 = vunpack.c.l.s4 %v1824_v5  ;;  %v1563_v10 = vld [vmem:[%s2650_s6] sm:$0xff]   ;;  %v1599_v5 = vld [vmem:[%s2650_s6 + $0x30] sm:$0xff]   ;;  %p1738_p5 = pnand %p1737_p3, %p1731_p0 }
 0x1b6   : > { %v1054_v53 = vmul.f32 %v1052_v13, %v1037_v1  ;;  %v2515_v51 = vshrl.u32 %v1106_v61, 7  ;;  %v1565_v37 = vunpack.c.h.bf16 %v1563_v10  ;;  %v1564_v55 = vunpack.c.l.bf16 %v1563_v10 }
 0x1b7   : > { %v857_v25 = vadd.f32 %v856_v9, %v836_v11  ;;  %v1105_v48 = vunpack.c.0.s8 %v1104_v2  ;;  %v1569_v46 = vunpack.c.h.bf16 %v1594_v30  ;;  %v1568_v32 = vunpack.c.l.bf16 %v1594_v30 }
 0x1b8   : > { %v2522_v43 = vsub.s32 0, %v2515_v51  ;;  %v1573_v16 = vunpack.c.h.bf16 %v1595_v24  ;;  %v1572_v21 = vunpack.c.l.bf16 %v1595_v24  ;;  %v1581_v18 = vunpack.c.h.bf16 %v1597_v57 }
 0x1b9   : > { %v902_v17 = vadd.f32 %v901_v28, %v857_v25  ;;  %v1108_v34 = vsub.s32 %v1105_v48, %v2515_v51  ;;  %v1580_v31 = vunpack.c.l.bf16 %v1597_v57  ;;  %v1589_v48 = vunpack.c.h.bf16 %v1599_v5 }
 0x1bb   : > { %v923_v0 = vadd.f32 %v922_v41, %v902_v17 }
 0x1bd   : > { %v968_v29 = vadd.f32 %v967_v59, %v923_v0 }
 0x1bf   : > { %v989_v54 = vadd.f32 %v988_v52, %v968_v29  ;;  %v1596_v29 = vld [vmem:[%s2650_s6 + $0x18] sm:$0xff]  }
 0x1c0   : > { %v1577_v13 = vunpack.c.h.bf16 %v1596_v29  ;;  %v1576_v1 = vunpack.c.l.bf16 %v1596_v29 }
 0x1c1   : > { %v1034_v36 = vadd.f32 %v1033_v26, %v989_v54 }
 0x1c3   : > { %v1055_v40 = vadd.f32 %v1054_v53, %v1034_v36 }
 0x1c5   : > { %v1057_v60 = vsel %vm1056_vm10, %v1055_v40, -inf }
 0x1c6   : > { %1058 = vmax.xlane.f32.xlu1 %v1057_v60  ;;  %v1598_v60 = vld [vmem:[%s2650_s6 + $0x28] sm:$0xff]  }
 0x24f   : > { %v1059_v27 = vpop.xlane.xlu1 %1058 }
 0x250   : > { %v1060_v45 = vsub.f32 %v1055_v40, %v1059_v27  ;;  %v1585_v27 = vunpack.c.h.bf16 %v1598_v60 }
 0x252   : > { %v1061_v7 = vmul.f32 1.442695, %v1060_v45 }
 0x254   : > { %1724 = vpow2.f32 %v1061_v7  ;;  %v1584_v7 = vunpack.c.l.bf16 %v1598_v60 }
 0x261   : > { %v1725_v44 = vpop.eup %1724 }
 0x262   : > { %v1063_v33 = vsel %vm1056_vm10, %v1725_v44, 0.0 }
 0x263   : > { %1064 = vadd.xlane.f32.xlu0 %v1063_v33 }
 0x2ec   : > { %v1065_v42 = vpop.xlane.xlu0 %1064 }
 0x2ed   : > { %1726 = vrcp.f32 %v1065_v42 }
 0x2fa   : > { %v1727_v49 = vpop.eup %1726 }
 0x2fb   : > { %v1067_v47 = vmul.f32 %v1727_v49, %v1725_v44  ;;  %v1588_v49 = vunpack.c.l.bf16 %v1599_v5 }
 0x2fd   : > { %v1068_v3 = vpack.c.bf16 %v1067_v47, %v1067_v47  ;;  %v1109_v14 = vrot.slane %v1067_v47, %v1108_v34  ;;  %v1102_v50 = vcombine.high %v1067_v47, %v1067_v47 }
 0x2ff   : > { %1630 = vmatmul.mubr.msk.bf16.vlgmr.msra.gmra.mxu0 %vm1056_vm10, %v1068_v3  ;;  %v1125_v56 = vrot.slane %v1109_v14, %v1108_v34  ;;  %v1117_v9 = vcombine.high %v1109_v14, %v1109_v14  ;;  %v1116_v63 = vrot.slane %v1102_v50, %v1108_v34  ;;  %v1600_v14 = vld [vmem:[%s2650_s6 + $0x38] sm:$0xff]  }
 0x301   : > { %v1154_v11 = vrot.slane %v1125_v56, %v2522_v43  ;;  %v1139_v58 = vrot.slane %v1117_v9, %v1108_v34  ;;  %v1147_v62 = vcombine.high %v1125_v56, %v1125_v56  ;;  %v1132_v20 = vrot.slane %v1116_v63, %v1108_v34 }
 0x302   : > { %v1118_v8 = vcombine.high %v1116_v63, %v1116_v63  ;;  %v1592_v56 = vunpack.c.l.bf16 %v1600_v14 }
 0x303   : > { %v1192_v28 = vmul.f32 %v1565_v37, %v1154_v11  ;;  %v1191_v39 = vmul.f32 %v1564_v55, %v1154_v11  ;;  %v1158_v15 = vrot.slane %v1139_v58, %v2522_v43  ;;  %v1162_v25 = vrot.slane %v1147_v62, %v2522_v43 }
 0x304   : > { %v1170_v17 = vrot.slane %v1132_v20, %v2522_v43  ;;  %v1149_v59 = vcombine.high %v1139_v58, %v1139_v58  ;;  %v1146_v26 = vrot.slane %v1118_v8, %v1108_v34  ;;  %v1148_v44 = vcombine.high %v1132_v20, %v1132_v20 }
 0x305   : > { %v1210_v19 = vsel %vm1056_vm10, %v1192_v28, 0.0  ;;  %v1207_v12 = vsel %vm1056_vm10, %v1191_v39, 0.0  ;;  %v1194_v41 = vmul.f32 %v1569_v46, %v1158_v15  ;;  %v1193_v23 = vmul.f32 %v1568_v32, %v1158_v15 }
 0x306   : > { %1211 = vadd.xlane.f32.xlu1 %v1210_v19  ;;  %1208 = vadd.xlane.f32.xlu0 %v1207_v12  ;;  %v1196_v38 = vmul.f32 %v1573_v16, %v1162_v25  ;;  %v1195_v52 = vmul.f32 %v1572_v21, %v1162_v25  ;;  %v1200_v6 = vmul.f32 %v1581_v18, %v1170_v17  ;;  %v1593_v37 = vunpack.c.h.bf16 %v1600_v14 }
 0x307   : > { %v1216_v0 = vsel %vm1056_vm10, %v1194_v41, 0.0  ;;  %v1213_v4 = vsel %vm1056_vm10, %v1193_v23, 0.0  ;;  %v1199_v36 = vmul.f32 %v1580_v31, %v1170_v17  ;;  %v1166_v40 = vrot.slane %v1149_v59, %v2522_v43 }
 0x308   : > { %v1222_v54 = vsel %vm1056_vm10, %v1196_v38, 0.0  ;;  %v1219_v53 = vsel %vm1056_vm10, %v1195_v52, 0.0  ;;  %v1174_v45 = vrot.slane %v1146_v26, %v2522_v43  ;;  %v1234_v33 = vsel %vm1056_vm10, %v1200_v6, 0.0 }
 0x309   : > { %v1231_v22 = vsel %vm1056_vm10, %v1199_v36, 0.0  ;;  %v1198_v35 = vmul.f32 %v1577_v13, %v1166_v40  ;;  %v1197_v42 = vmul.f32 %v1576_v1, %v1166_v40  ;;  %v1178_v34 = vrot.slane %v1148_v44, %v2522_v43 }
 0x30a   : > { %1217 = vadd.xlane.f32.xlu1 %v1216_v0  ;;  %1214 = vadd.xlane.f32.xlu0 %v1213_v4  ;;  %v1202_v2 = vmul.f32 %v1585_v27, %v1174_v45  ;;  %v1201_v3 = vmul.f32 %v1584_v7, %v1174_v45  ;;  %v1150_v30 = vcombine.high %v1146_v26, %v1146_v26  ;;  %v1272_v41 = vand.u32 127, %v1106_v61 }
 0x30b   : > { %v1228_v47 = vsel %vm1056_vm10, %v1198_v35, 0.0  ;;  %v1225_v10 = vsel %vm1056_vm10, %v1197_v42, 0.0  ;;  %v1204_v50 = vmul.f32 %v1589_v48, %v1178_v34  ;;  %v1203_v46 = vmul.f32 %v1588_v49, %v1178_v34 }
 0x30c   : > { %v1240_v55 = vsel %vm1056_vm10, %v1202_v2, 0.0  ;;  %v1237_v9 = vsel %vm1056_vm10, %v1201_v3, 0.0  ;;  %v1182_v63 = vrot.slane %v1150_v30, %v2522_v43  ;;  %v1277_v23 = vadd.s32 4294967288, %v1272_v41 }
 0x30d   : > { %v1246_v11 = vsel %vm1056_vm10, %v1204_v50, 0.0  ;;  %v1243_v58 = vsel %vm1056_vm10, %v1203_v46, 0.0  ;;  %v1275_v59 = vsub.s32 %v1272_v41, %v2515_v51 }
 0x30e   : > { %1223 = vadd.xlane.f32.xlu1 %v1222_v54  ;;  %1220 = vadd.xlane.f32.xlu0 %v1219_v53  ;;  %v1206_v32 = vmul.f32 %v1593_v37, %v1182_v63  ;;  %v1205_v24 = vmul.f32 %v1592_v56, %v1182_v63  ;;  %v1280_v31 = vsub.s32 %v1277_v23, %v2515_v51 }
 0x310   : > { %v1252_v62 = vsel %vm1056_vm10, %v1206_v32, 0.0  ;;  %v1249_v28 = vsel %vm1056_vm10, %v1205_v24, 0.0 }
 0x312   : > { %1235 = vadd.xlane.f32.xlu1 %v1234_v33  ;;  %1232 = vadd.xlane.f32.xlu0 %v1231_v22 }
 0x316   : > { %1229 = vadd.xlane.f32.xlu1 %v1228_v47  ;;  %1226 = vadd.xlane.f32.xlu0 %v1225_v10 }
 0x31a   : > { %1241 = vadd.xlane.f32.xlu1 %v1240_v55  ;;  %1238 = vadd.xlane.f32.xlu0 %v1237_v9 }
 0x31e   : > { %1247 = vadd.xlane.f32.xlu1 %v1246_v11  ;;  %1244 = vadd.xlane.f32.xlu0 %v1243_v58 }
 0x322   : > { %1253 = vadd.xlane.f32.xlu1 %v1252_v62  ;;  %1250 = vadd.xlane.f32.xlu0 %v1249_v28 }
 0x38f   : > { %v1212_v39 = vpop.xlane.xlu1 %1211  ;;  %v1209_v15 = vpop.xlane.xlu0 %1208 }
 0x390   : > { %v1281_v52 = vrot.slane %v1212_v39, %v1280_v31  ;;  %v1276_v29 = vrot.slane %v1209_v15, %v1275_v59 }
 0x392   : > { %v1283_v54 = vsel %vm1282_vm12, %v1281_v52, %v1276_v29 }
 0x393   : > { %v1218_v16 = vpop.xlane.xlu1 %1217  ;;  %v1215_v43 = vpop.xlane.xlu0 %1214 }
 0x394   : > { %v1291_v8 = vrot.slane %v1218_v16, %v1280_v31  ;;  %v1287_v0 = vrot.slane %v1215_v43, %v1275_v59 }
 0x396   : > { %v1292_v26 = vsel %vm1282_vm12, %v1291_v8, %v1287_v0 }
 0x397   : > { %v1224_v25 = vpop.xlane.xlu1 %1223  ;;  %v1221_v21 = vpop.xlane.xlu0 %1220  ;;  %v1347_v40 = vsel %vm504_vm3, %v1292_v26, %v1283_v54 }
 0x398   : > { %v1300_v6 = vrot.slane %v1224_v25, %v1280_v31  ;;  %v1296_v13 = vrot.slane %v1221_v21, %v1275_v59 }
 0x39a   : > { %v1301_v53 = vsel %vm1282_vm12, %v1300_v6, %v1296_v13 }
 0x39b   : > { %v1236_v57 = vpop.xlane.xlu1 %1235  ;;  %v1233_v20 = vpop.xlane.xlu0 %1232  ;;  %v1348_v35 = vsel %vm507_vm4, %v1301_v53, %v1347_v40 }
 0x39c   : > { %v1318_v7 = vrot.slane %v1236_v57, %v1280_v31  ;;  %v1314_v44 = vrot.slane %v1233_v20, %v1275_v59 }
 0x39e   : > { %v1319_v34 = vsel %vm1282_vm12, %v1318_v7, %v1314_v44 }
 0x39f   : > { %v1230_v19 = vpop.xlane.xlu1 %1229  ;;  %v1227_v12 = vpop.xlane.xlu0 %1226 }
 0x3a0   : > { %v1309_v1 = vrot.slane %v1230_v19, %v1280_v31  ;;  %v1305_v61 = vrot.slane %v1227_v12, %v1275_v59 }
 0x3a2   : > { %v1310_v60 = vsel %vm1282_vm12, %v1309_v1, %v1305_v61 }
 0x3a3   : > { %v1242_v18 = vpop.xlane.xlu1 %1241  ;;  %v1239_v17 = vpop.xlane.xlu0 %1238  ;;  %v1349_v2 = vsel %vm510_vm5, %v1310_v60, %v1348_v35 }
 0x3a4   : > { %v1327_v27 = vrot.slane %v1242_v18, %v1280_v31  ;;  %v1323_v45 = vrot.slane %v1239_v17, %v1275_v59  ;;  %v1350_v10 = vsel %vm513_vm6, %v1319_v34, %v1349_v2 }
 0x3a6   : > { %v1328_v48 = vsel %vm1282_vm12, %v1327_v27, %v1323_v45 }
 0x3a7   : > { %v1248_v4 = vpop.xlane.xlu1 %1247  ;;  %v1245_v38 = vpop.xlane.xlu0 %1244  ;;  %v1351_v3 = vsel %vm516_vm7, %v1328_v48, %v1350_v10 }
 0x3a8   : > { %v1336_v33 = vrot.slane %v1248_v4, %v1280_v31  ;;  %v1332_v22 = vrot.slane %v1245_v38, %v1275_v59 }
 0x3aa   : > { %v1337_v49 = vsel %vm1282_vm12, %v1336_v33, %v1332_v22 }
 0x3ab   : > { %v1254_v51 = vpop.xlane.xlu1 %1253  ;;  %v1251_v36 = vpop.xlane.xlu0 %1250  ;;  %v1352_v14 = vsel %vm519_vm8, %v1337_v49, %v1351_v3 }
 0x3ac   : > { %v1345_v42 = vrot.slane %v1254_v51, %v1280_v31  ;;  %v1341_v5 = vrot.slane %v1251_v36, %v1275_v59 }
 0x3ae   : > { %v1346_v47 = vsel %vm1282_vm12, %v1345_v42, %v1341_v5 }
 0x3af   : > { %v1353_v30 = vsel %vm522_vm9, %v1346_v47, %v1352_v14 }
 0x3bf   : > { %v1396_v50 = vpop.f32.mrf.mxu0 }
 0x3c0   : > { %v1397_v37 = vadd.f32 %v1396_v50, %v1353_v30 }
 0x3c1   : > { %v1631_v56 = vpop.f32.mrf.mxu0 }
 0x3c2   : > { %1402 = vst.msk [vmem:[%s353_s8] sm:$0xff] %vm526_vm2, %v1397_v37 }
 0x3c3   : > { %v1399_v55 = vpop.f32.mrf.mxu0 }
 0x3c4   : > { %1741 = shalt.err (!%p1738_p5)
}
 0x3c5   : > { %s1742_s15 = scalar_lea.hbm %s2595_s17, 128  ;;  %s1746_s30 = scalar_lea.hbm %s2651_s7, 256 }
 0x3c6   : > { %p1743_p6 = scmp.ne.s32.totalorder %s2595_s17, %s1742_s15  ;;  %p1747_p10 = scmp.lt.s32.totalorder %s2595_s17, %s2651_s7 }
 0x3c7   : > { %p1748_p11 = scmp.lt.s32.totalorder %s1746_s30, %s1742_s15 }
 0x3c8   : > { %p1744_p7 = pnand %p1743_p6, %p1906_p4 }
 0x3c9   : > { %p1749_p12 = por %p1748_p11, %p1747_p10 }
 0x3ca   : > { %p1745_p9 = pneg %p1744_p7 }
 0x3cc   : > { %p1750_p13 = pnand %p1749_p12, %p1745_p9 }
 0x3ce   : > { %1753 = shalt.err (!%p1750_p13)
}
 0x3cf   : > { %1633 = dma.vmem_to_hbm [thread:$0]  (%p1906_p4), %s2597_s10, 128, %s2595_s17, %s1404_s27   ;;  %v1632_v9 = vpop.f32.mrf.mxu0 }
 0x3d0 PF: > { %p1639_p0 = scmp.ge.s32.totalorder %s1804_s29, 2  ;;  %s1430_s16 = sand.u32 1, %s1784_s24  }
 0x3d1   : > { %s1431_s18 = scalar_lea.sflag [#allocation3], %s1430_s16 }
 0x3d2   : > { %p1636_p1 = pnand %p1639_p0, %p1913_p8 }
 0x3d4   : > { %p1637_p2 = pneg %p1636_p1 }
 0x3d6   : > { %1779 = dma.done.wait (%p1637_p2), %s1431_s18, 128  }
 0x3d7   : > { %1781 = vsyncadd (%p1637_p2), %s1431_s18, 4294967168  ;;  %s20_s29 = sadd.s32 1, %s1804_s29   ;;  %s2664_s24 = smov %s1788_s25 }
 0x3d8   : > { %p17_p3 = scmp.ge.s32.totalorder %s20_s29, 4   ;;  %s2665_s25 = smov %s1792_s26 }
 0x3d9   : > { %s2666_s26 = smov %s1919_s14  ;;  %s2667_s27 = smov %s1800_s28 }
 0x3da   : > { %s2668_s28 = smov %s2670_s9  ;;  %19 = sbr.rel (!%p17_p3) target bundleno = 4 (0x4), region = 95 }
 0x3df   :  { %1436 = vsyncpa [#allocation3], 1 }
 0x3e0   :  { %1438 = vsyncpa [#allocation3 + $0x1], 1 }

</bundles_post_ra>
